<compile_context>
chip_gen: v5e
topology: v5e:2x2
jax: 0.10.0
libtpu: 0.0.40
codegen_flags: <defaults>
</compile_context>

<pallas_src>
import math

import jax
import jax.numpy as jnp
from jax import lax
from jax.experimental import pallas as pl
from jax.experimental.pallas import tpu as pltpu

# ----- static configuration -------------------------------------------------
B, N, H = 2, 8, 32          # batch, seq, hidden
HEADS, D = 4, 8             # num_attention_heads, attention_head_size
MAX_REL = 16                # max_relative_positions (= max_position_embeddings)
SPAN = MAX_REL              # pos_ebd_size (no position buckets)
TWO_S = 2 * SPAN            # 32
SCALE_FACTOR = 3            # 1 + ('c2p') + ('p2c')
INV_SCALE = 1.0 / math.sqrt(D * SCALE_FACTOR)   # compile-time constant

# NOTE: NEG_INF is intentionally finfo(f32).min (FINITE), matching HF XSoftmax.
# Do NOT "fix" this to -inf: fully-masked (padded) rows rely on a uniform
# softmax that is re-zeroed afterwards; -inf would produce NaNs.
NEG_INF = float(jnp.finfo(jnp.float32).min)


def _mm_nt(a, b):
    """a [m,k] contracted with b [n,k] -> [m,n] (MXU, f32 accumulation)."""
    return lax.dot_general(a, b, (((1,), (1,)), ((), ())),
                           preferred_element_type=jnp.float32)


# ----- Pallas kernel: one batch element per grid point (all heads inside) ----
def _dsa_kernel(hid_ref, mask_ref,
                wqkv_ref, bqkv_ref, wpos_ref, bpos_ref,
                rel_ref, oh_ref,
                out_ref):
    x = hid_ref[0]                                                    # [N, H]

    # Fused content projections: single [N,H]@[H,3H] MXU push (q|k|v, all heads).
    qkv = jnp.dot(x, wqkv_ref[...],
                  preferred_element_type=jnp.float32) + bqkv_ref[...]  # [N, 3H]

    # Fused positional projections: single [2S,H]@[H,2H] push (pos_k|pos_q).
    rel = rel_ref[...]                                                # [2S, H]
    pos = jnp.dot(rel, wpos_ref[...],
                  preferred_element_type=jnp.float32) + bpos_ref[...]  # [2S, 2H]

    rmask = mask_ref[0] == 0                                          # [N, N]
    oh = oh_ref[...]                                                  # [Nq, Nk, 2S]

    # Static (unrolled) head loop; all tensors here are a few vregs at most.
    ctxs = []
    for h in range(HEADS):
        lo, hi = h * D, (h + 1) * D
        qh = qkv[:, lo:hi]                                            # [N, D]
        kh = qkv[:, H + lo:H + hi]                                    # [N, D]
        vh = qkv[:, 2 * H + lo:2 * H + hi]                            # [N, D]
        pkh = pos[:, lo:hi]                                           # [2S, D]
        pqh = pos[:, H + lo:H + hi]                                   # [2S, D]

        scores = _mm_nt(qh, kh)                                       # [N, N]
        c2p_att = _mm_nt(qh, pkh)                                     # [N, 2S]
        p2c_att = _mm_nt(kh, pqh)                                     # [N, 2S]

        # Relative-position gathers realized with the shared one-hot table.
        # Valid because N <= att_span (no clipping); for N > SPAN the p2c table
        # must be rebuilt from -relpos as in the reference.
        # TODO(synk): for production N (512+) replace the O(N^2*2S) one-hot
        # with index arithmetic / diagonal-band gathers (VMEM would not fit).
        c2p = jnp.sum(c2p_att[:, None, :] * oh, axis=-1)              # [Nq, Nk]
        p2c = jnp.sum(p2c_att[None, :, :] * oh, axis=-1)              # [Nq, Nk]

        scores = (scores + c2p + p2c) * INV_SCALE

        # XSoftmax: masked fill with finfo.min, softmax, re-zero masked positions
        masked = jnp.where(rmask, NEG_INF, scores)
        m = jnp.max(masked, axis=-1, keepdims=True)
        e = jnp.exp(masked - m)
        s = jnp.sum(e, axis=-1, keepdims=True)
        probs = jnp.where(rmask, 0.0, e / s)

        # context = probs @ v   (dropout is identity in eval mode)
        ctxs.append(jnp.dot(probs, vh, preferred_element_type=jnp.float32))

    # Heads concatenated on the lane axis -> lane-dense [N, H] store.
    out_ref[0] = jnp.concatenate(ctxs, axis=-1)


def disentangled_self_attention(hidden, mask, params, oh_rel):
    """Wrapper: fuse weights (layout plumbing only), single pallas_call."""
    (wq, bq, wk, bk, wv, bv, pwk, pbk, pwq, pbq, rel_emb) = params

    # Lane-axis weight/bias fusion (tiny, one-time layout plumbing; no compute
    # is hoisted out of the kernel).
    w_qkv = jnp.concatenate([wq, wk, wv], axis=1)                     # [H, 3H]
    b_qkv = jnp.concatenate([bq, bk, bv], axis=0).reshape(1, 3 * H)   # [1, 3H]
    w_pos = jnp.concatenate([pwk, pwq], axis=1)                       # [H, 2H]
    b_pos = jnp.concatenate([pbk, pbq], axis=0).reshape(1, 2 * H)     # [1, 2H]

    return pl.pallas_call(
        _dsa_kernel,
        out_shape=jax.ShapeDtypeStruct((B, N, H), jnp.float32),
        grid_spec=pltpu.PrefetchScalarGridSpec(
            num_scalar_prefetch=0,
            grid=(B,),
            in_specs=[
                pl.BlockSpec((1, N, H), lambda b: (b, 0, 0)),      # hidden_states
                pl.BlockSpec((1, N, N), lambda b: (b, 0, 0)),      # attention_mask
                pl.BlockSpec((H, 3 * H), lambda b: (0, 0)),        # fused q|k|v weight
                pl.BlockSpec((1, 3 * H), lambda b: (0, 0)),        # fused q|k|v bias
                pl.BlockSpec((H, 2 * H), lambda b: (0, 0)),        # fused pos_k|pos_q weight
                pl.BlockSpec((1, 2 * H), lambda b: (0, 0)),        # fused pos_k|pos_q bias
                pl.BlockSpec((TWO_S, H), lambda b: (0, 0)),        # rel_embeddings
                pl.BlockSpec((N, N, TWO_S), lambda b: (0, 0, 0)),  # rel-pos one-hot
            ],
            out_specs=pl.BlockSpec((1, N, H), lambda b: (b, 0, 0)),
        ),
        compiler_params=pltpu.CompilerParams(
            dimension_semantics=("parallel",)),   # 2-wide batch axis -> both TCs on v7x
    )(hidden, mask, w_qkv, b_qkv, w_pos, b_pos, rel_emb, oh_rel)


# ----- pure-JAX reference (mirrors the torch forward, eval mode) --------------
def _reference(hidden, mask, params):
    (wq, bq, wk, bk, wv, bv, pwk, pbk, pwq, pbq, rel_emb) = params
    hp = lax.Precision.HIGHEST

    def t4s(x):  # transpose_for_scores
        bb, nn, _ = x.shape
        return x.reshape(bb, nn, HEADS, D).transpose(0, 2, 1, 3).reshape(bb * HEADS, nn, D)

    q = t4s(hidden @ wq + bq)
    k = t4s(hidden @ wk + bk)
    v = t4s(hidden @ wv + bv)
    scale = jnp.sqrt(jnp.float32(D * SCALE_FACTOR))
    scores = jnp.einsum('bnd,bmd->bnm', q, k / scale, precision=hp)

    relpos = jnp.arange(N)[:, None] - jnp.arange(N)[None, :]
    pos_k = jnp.tile(t4s((rel_emb @ pwk + pbk)[None]), (B, 1, 1))
    pos_q = jnp.tile(t4s((rel_emb @ pwq + pbq)[None]), (B, 1, 1))

    c2p_att = jnp.einsum('bnd,bsd->bns', q, pos_k, precision=hp)
    c2p_pos = jnp.clip(relpos + SPAN, 0, TWO_S - 1)
    c2p = jnp.take_along_axis(
        c2p_att, jnp.broadcast_to(c2p_pos[None], (B * HEADS, N, N)), axis=-1)

    p2c_att = jnp.einsum('bnd,bsd->bns', k, pos_q, precision=hp)
    p2c_pos = jnp.clip(-relpos + SPAN, 0, TWO_S - 1)
    p2c = jnp.take_along_axis(
        p2c_att, jnp.broadcast_to(p2c_pos[None], (B * HEADS, N, N)), axis=-1)
    p2c = jnp.swapaxes(p2c, -1, -2)

    scores = (scores + c2p / scale + p2c / scale).reshape(B, HEADS, N, N)
    rmask = mask[:, None, :, :] == 0
    masked = jnp.where(rmask, NEG_INF, scores)
    probs = jax.nn.softmax(masked, axis=-1)
    probs = jnp.where(rmask, 0.0, probs)
    ctx = jnp.einsum('bnm,bmd->bnd', probs.reshape(B * HEADS, N, N), v, precision=hp)
    return ctx.reshape(B, HEADS, N, D).transpose(0, 2, 1, 3).reshape(B, N, H)


if __name__ == "__main__":
    key = jax.random.PRNGKey(0)
    ks = jax.random.split(key, 16)

    hidden = jax.random.normal(ks[0], (B, N, H), jnp.float32)
    rel_emb = jax.random.normal(ks[1], (2 * MAX_REL, H), jnp.float32)  # [0:2*span] slice == full

    def w(i):
        return 0.05 * jax.random.normal(ks[i], (H, HEADS * D), jnp.float32)

    def bias(i):
        return 0.02 * jax.random.normal(ks[i], (HEADS * D,), jnp.float32)

    params = (w(2), bias(3),    # query_proj
              w(4), bias(5),    # key_proj
              w(6), bias(7),    # value_proj
              w(8), bias(9),    # pos_key_proj
              w(10), bias(11))  # pos_query_proj
    params = params + (rel_emb,)

    # padding-style attention mask: batch 0 has 8 valid tokens, batch 1 has 6
    lengths = jnp.array([8, 6])
    valid = (jnp.arange(N)[None, :] < lengths[:, None]).astype(jnp.int32)   # [B, N]
    mask = valid[:, :, None] * valid[:, None, :]                            # [B, N, N]

    # Relative-position gather indices as a single one-hot table, shared by the
    # c2p and the (pre-transposed) p2c gathers.  Identical only because
    # N <= SPAN here (no clipping); see kernel comment.
    relpos = jnp.arange(N)[:, None] - jnp.arange(N)[None, :]                # [Nq, Nk]
    rel_idx = jnp.clip(relpos + SPAN, 0, TWO_S - 1)
    oh_rel = (rel_idx[:, :, None] == jnp.arange(TWO_S)[None, None, :]).astype(jnp.float32)

    out = disentangled_self_attention(hidden, mask, params, oh_rel)
    out = jax.block_until_ready(out)

    ref = _reference(hidden, mask, params)
    if not jnp.allclose(out, ref, atol=1e-3, rtol=1e-2):
        raise AssertionError(
            f"mismatch vs reference, max abs diff {jnp.max(jnp.abs(out - ref))}")

    print("KERNEL_OK")
</pallas_src>

<mosaic_0001>
module attributes {stable_mosaic.version = 11 : i64} {
  func.func @_dsa_kernel(%arg0: i32, %arg1: memref<1x8x32xf32, #tpu.memory_space<vmem>>, %arg2: memref<1x8x8xi32, #tpu.memory_space<vmem>>, %arg3: memref<32x96xf32, #tpu.memory_space<vmem>>, %arg4: memref<1x96xf32, #tpu.memory_space<vmem>>, %arg5: memref<32x64xf32, #tpu.memory_space<vmem>>, %arg6: memref<1x64xf32, #tpu.memory_space<vmem>>, %arg7: memref<32x32xf32, #tpu.memory_space<vmem>>, %arg8: memref<8x8x32xf32, #tpu.memory_space<vmem>>, %arg9: memref<1x8x32xf32, #tpu.memory_space<vmem>>) attributes {dimension_semantics = [#tpu.dimension_semantics<parallel>], iteration_bounds = array<i64: 2>, scalar_prefetch = 0 : i64, scratch_operands = 0 : i64, tpu.core_type = #tpu.core_type<tc>, window_params = [{transform_indices = @transform_0, window_bounds = array<i64: 1, 8, 32>}, {transform_indices = @transform_1, window_bounds = array<i64: 1, 8, 8>}, {pipeline_mode = #tpu.pipeline_mode<synchronous>, transform_indices = @transform_2, window_bounds = array<i64: 32, 96>}, {pipeline_mode = #tpu.pipeline_mode<synchronous>, transform_indices = @transform_3, window_bounds = array<i64: 1, 96>}, {pipeline_mode = #tpu.pipeline_mode<synchronous>, transform_indices = @transform_4, window_bounds = array<i64: 32, 64>}, {pipeline_mode = #tpu.pipeline_mode<synchronous>, transform_indices = @transform_5, window_bounds = array<i64: 1, 64>}, {pipeline_mode = #tpu.pipeline_mode<synchronous>, transform_indices = @transform_6, window_bounds = array<i64: 32, 32>}, {pipeline_mode = #tpu.pipeline_mode<synchronous>, transform_indices = @transform_7, window_bounds = array<i64: 8, 8, 32>}, {transform_indices = @transform_8, window_bounds = array<i64: 1, 8, 32>}]} {
    %c0 = arith.constant 0 : index
    %c0_0 = arith.constant 0 : index
    %c0_1 = arith.constant 0 : index
    %0 = vector.load %arg1[%c0, %c0_0, %c0_1] : memref<1x8x32xf32, #tpu.memory_space<vmem>>, vector<1x8x32xf32>
    %1 = vector.shape_cast %0 : vector<1x8x32xf32> to vector<8x32xf32>
    %c0_2 = arith.constant 0 : index
    %c0_3 = arith.constant 0 : index
    %2 = vector.load %arg3[%c0_2, %c0_3] : memref<32x96xf32, #tpu.memory_space<vmem>>, vector<32x96xf32>
    %cst = arith.constant dense<0.000000e+00> : vector<8x96xf32>
    %3 = tpu.matmul %1, %2, %cst {dimension_numbers = #tpu.dot_dimension_numbers<[1], [0], [0], [1], [0, 0, 1, 1], [], []>} : vector<8x32xf32>, vector<32x96xf32>, vector<8x96xf32> -> vector<8x96xf32>
    %c0_4 = arith.constant 0 : index
    %c0_5 = arith.constant 0 : index
    %4 = vector.load %arg4[%c0_4, %c0_5] : memref<1x96xf32, #tpu.memory_space<vmem>>, vector<1x96xf32>
    %5 = vector.broadcast %4 : vector<1x96xf32> to vector<8x96xf32>
    %6 = arith.addf %3, %5 : vector<8x96xf32>
    %c0_6 = arith.constant 0 : index
    %c0_7 = arith.constant 0 : index
    %7 = vector.load %arg7[%c0_6, %c0_7] : memref<32x32xf32, #tpu.memory_space<vmem>>, vector<32x32xf32>
    %c0_8 = arith.constant 0 : index
    %c0_9 = arith.constant 0 : index
    %8 = vector.load %arg5[%c0_8, %c0_9] : memref<32x64xf32, #tpu.memory_space<vmem>>, vector<32x64xf32>
    %cst_10 = arith.constant dense<0.000000e+00> : vector<32x64xf32>
    %9 = tpu.matmul %7, %8, %cst_10 {dimension_numbers = #tpu.dot_dimension_numbers<[1], [0], [0], [1], [0, 0, 1, 1], [], []>} : vector<32x32xf32>, vector<32x64xf32>, vector<32x64xf32> -> vector<32x64xf32>
    %c0_11 = arith.constant 0 : index
    %c0_12 = arith.constant 0 : index
    %10 = vector.load %arg6[%c0_11, %c0_12] : memref<1x64xf32, #tpu.memory_space<vmem>>, vector<1x64xf32>
    %11 = vector.broadcast %10 : vector<1x64xf32> to vector<32x64xf32>
    %12 = arith.addf %9, %11 : vector<32x64xf32>
    %c0_13 = arith.constant 0 : index
    %c0_14 = arith.constant 0 : index
    %c0_15 = arith.constant 0 : index
    %13 = vector.load %arg2[%c0_13, %c0_14, %c0_15] : memref<1x8x8xi32, #tpu.memory_space<vmem>>, vector<1x8x8xi32>
    %14 = vector.shape_cast %13 : vector<1x8x8xi32> to vector<8x8xi32>
    %c0_i32 = arith.constant 0 : i32
    %15 = vector.broadcast %c0_i32 : i32 to vector<8x8xi32>
    %16 = arith.cmpi eq, %14, %15 : vector<8x8xi32>
    %c0_16 = arith.constant 0 : index
    %c0_17 = arith.constant 0 : index
    %c0_18 = arith.constant 0 : index
    %17 = vector.load %arg8[%c0_16, %c0_17, %c0_18] : memref<8x8x32xf32, #tpu.memory_space<vmem>>, vector<8x8x32xf32>
    %18 = vector.extract_strided_slice %6 {offsets = [0, 0], sizes = [8, 8], strides = [1, 1]} : vector<8x96xf32> to vector<8x8xf32>
    %19 = vector.extract_strided_slice %6 {offsets = [0, 32], sizes = [8, 8], strides = [1, 1]} : vector<8x96xf32> to vector<8x8xf32>
    %20 = vector.extract_strided_slice %6 {offsets = [0, 64], sizes = [8, 8], strides = [1, 1]} : vector<8x96xf32> to vector<8x8xf32>
    %21 = vector.extract_strided_slice %12 {offsets = [0, 0], sizes = [32, 8], strides = [1, 1]} : vector<32x64xf32> to vector<32x8xf32>
    %22 = vector.extract_strided_slice %12 {offsets = [0, 32], sizes = [32, 8], strides = [1, 1]} : vector<32x64xf32> to vector<32x8xf32>
    %cst_19 = arith.constant dense<0.000000e+00> : vector<8x8xf32>
    %23 = tpu.matmul %18, %19, %cst_19 {dimension_numbers = #tpu.dot_dimension_numbers<[1], [1], [0], [0], [0, 0, 1, 0], [], []>} : vector<8x8xf32>, vector<8x8xf32>, vector<8x8xf32> -> vector<8x8xf32>
    %cst_20 = arith.constant dense<0.000000e+00> : vector<8x32xf32>
    %24 = tpu.matmul %18, %21, %cst_20 {dimension_numbers = #tpu.dot_dimension_numbers<[1], [1], [0], [0], [0, 0, 1, 0], [], []>} : vector<8x8xf32>, vector<32x8xf32>, vector<8x32xf32> -> vector<8x32xf32>
    %cst_21 = arith.constant dense<0.000000e+00> : vector<8x32xf32>
    %25 = tpu.matmul %19, %22, %cst_21 {dimension_numbers = #tpu.dot_dimension_numbers<[1], [1], [0], [0], [0, 0, 1, 0], [], []>} : vector<8x8xf32>, vector<32x8xf32>, vector<8x32xf32> -> vector<8x32xf32>
    %26 = vector.shape_cast %24 : vector<8x32xf32> to vector<8x1x32xf32>
    %27 = vector.broadcast %26 : vector<8x1x32xf32> to vector<8x8x32xf32>
    %28 = arith.mulf %27, %17 : vector<8x8x32xf32>
    %cst_22 = arith.constant dense<0.000000e+00> : vector<8x8xf32>
    %29 = vector.multi_reduction <add>, %28, %cst_22 [2] : vector<8x8x32xf32> to vector<8x8xf32>
    %30 = vector.shape_cast %25 : vector<8x32xf32> to vector<1x8x32xf32>
    %31 = vector.broadcast %30 : vector<1x8x32xf32> to vector<8x8x32xf32>
    %32 = arith.mulf %31, %17 : vector<8x8x32xf32>
    %cst_23 = arith.constant dense<0.000000e+00> : vector<8x8xf32>
    %33 = vector.multi_reduction <add>, %32, %cst_23 [2] : vector<8x8x32xf32> to vector<8x8xf32>
    %34 = arith.addf %23, %29 : vector<8x8xf32>
    %35 = arith.addf %34, %33 : vector<8x8xf32>
    %cst_24 = arith.constant 0.204124153 : f32
    %36 = vector.broadcast %cst_24 : f32 to vector<8x8xf32>
    %37 = arith.mulf %35, %36 : vector<8x8xf32>
    %cst_25 = arith.constant -3.40282347E+38 : f32
    %38 = vector.broadcast %cst_25 : f32 to vector<8x8xf32>
    %39 = arith.select %16, %38, %37 : vector<8x8xi1>, vector<8x8xf32>
    %cst_26 = arith.constant dense<0xFF800000> : vector<8xf32>
    %40 = vector.multi_reduction <maximumf>, %39, %cst_26 [1] : vector<8x8xf32> to vector<8xf32>
    %41 = vector.shape_cast %40 : vector<8xf32> to vector<8x1xf32>
    %42 = vector.broadcast %41 : vector<8x1xf32> to vector<8x8xf32>
    %43 = arith.subf %39, %42 : vector<8x8xf32>
    %44 = math.exp %43 : vector<8x8xf32>
    %cst_27 = arith.constant dense<0.000000e+00> : vector<8xf32>
    %45 = vector.multi_reduction <add>, %44, %cst_27 [1] : vector<8x8xf32> to vector<8xf32>
    %46 = vector.shape_cast %45 : vector<8xf32> to vector<8x1xf32>
    %47 = vector.broadcast %46 : vector<8x1xf32> to vector<8x8xf32>
    %48 = arith.divf %44, %47 : vector<8x8xf32>
    %cst_28 = arith.constant 0.000000e+00 : f32
    %49 = vector.broadcast %cst_28 : f32 to vector<8x8xf32>
    %50 = arith.select %16, %49, %48 : vector<8x8xi1>, vector<8x8xf32>
    %cst_29 = arith.constant dense<0.000000e+00> : vector<8x8xf32>
    %51 = tpu.matmul %50, %20, %cst_29 {dimension_numbers = #tpu.dot_dimension_numbers<[1], [0], [0], [1], [0, 0, 1, 1], [], []>} : vector<8x8xf32>, vector<8x8xf32>, vector<8x8xf32> -> vector<8x8xf32>
    %52 = vector.extract_strided_slice %6 {offsets = [0, 8], sizes = [8, 8], strides = [1, 1]} : vector<8x96xf32> to vector<8x8xf32>
    %53 = vector.extract_strided_slice %6 {offsets = [0, 40], sizes = [8, 8], strides = [1, 1]} : vector<8x96xf32> to vector<8x8xf32>
    %54 = vector.extract_strided_slice %6 {offsets = [0, 72], sizes = [8, 8], strides = [1, 1]} : vector<8x96xf32> to vector<8x8xf32>
    %55 = vector.extract_strided_slice %12 {offsets = [0, 8], sizes = [32, 8], strides = [1, 1]} : vector<32x64xf32> to vector<32x8xf32>
    %56 = vector.extract_strided_slice %12 {offsets = [0, 40], sizes = [32, 8], strides = [1, 1]} : vector<32x64xf32> to vector<32x8xf32>
    %cst_30 = arith.constant dense<0.000000e+00> : vector<8x8xf32>
    %57 = tpu.matmul %52, %53, %cst_30 {dimension_numbers = #tpu.dot_dimension_numbers<[1], [1], [0], [0], [0, 0, 1, 0], [], []>} : vector<8x8xf32>, vector<8x8xf32>, vector<8x8xf32> -> vector<8x8xf32>
    %cst_31 = arith.constant dense<0.000000e+00> : vector<8x32xf32>
    %58 = tpu.matmul %52, %55, %cst_31 {dimension_numbers = #tpu.dot_dimension_numbers<[1], [1], [0], [0], [0, 0, 1, 0], [], []>} : vector<8x8xf32>, vector<32x8xf32>, vector<8x32xf32> -> vector<8x32xf32>
    %cst_32 = arith.constant dense<0.000000e+00> : vector<8x32xf32>
    %59 = tpu.matmul %53, %56, %cst_32 {dimension_numbers = #tpu.dot_dimension_numbers<[1], [1], [0], [0], [0, 0, 1, 0], [], []>} : vector<8x8xf32>, vector<32x8xf32>, vector<8x32xf32> -> vector<8x32xf32>
    %60 = vector.shape_cast %58 : vector<8x32xf32> to vector<8x1x32xf32>
    %61 = vector.broadcast %60 : vector<8x1x32xf32> to vector<8x8x32xf32>
    %62 = arith.mulf %61, %17 : vector<8x8x32xf32>
    %cst_33 = arith.constant dense<0.000000e+00> : vector<8x8xf32>
    %63 = vector.multi_reduction <add>, %62, %cst_33 [2] : vector<8x8x32xf32> to vector<8x8xf32>
    %64 = vector.shape_cast %59 : vector<8x32xf32> to vector<1x8x32xf32>
    %65 = vector.broadcast %64 : vector<1x8x32xf32> to vector<8x8x32xf32>
    %66 = arith.mulf %65, %17 : vector<8x8x32xf32>
    %cst_34 = arith.constant dense<0.000000e+00> : vector<8x8xf32>
    %67 = vector.multi_reduction <add>, %66, %cst_34 [2] : vector<8x8x32xf32> to vector<8x8xf32>
    %68 = arith.addf %57, %63 : vector<8x8xf32>
    %69 = arith.addf %68, %67 : vector<8x8xf32>
    %cst_35 = arith.constant 0.204124153 : f32
    %70 = vector.broadcast %cst_35 : f32 to vector<8x8xf32>
    %71 = arith.mulf %69, %70 : vector<8x8xf32>
    %cst_36 = arith.constant -3.40282347E+38 : f32
    %72 = vector.broadcast %cst_36 : f32 to vector<8x8xf32>
    %73 = arith.select %16, %72, %71 : vector<8x8xi1>, vector<8x8xf32>
    %cst_37 = arith.constant dense<0xFF800000> : vector<8xf32>
    %74 = vector.multi_reduction <maximumf>, %73, %cst_37 [1] : vector<8x8xf32> to vector<8xf32>
    %75 = vector.shape_cast %74 : vector<8xf32> to vector<8x1xf32>
    %76 = vector.broadcast %75 : vector<8x1xf32> to vector<8x8xf32>
    %77 = arith.subf %73, %76 : vector<8x8xf32>
    %78 = math.exp %77 : vector<8x8xf32>
    %cst_38 = arith.constant dense<0.000000e+00> : vector<8xf32>
    %79 = vector.multi_reduction <add>, %78, %cst_38 [1] : vector<8x8xf32> to vector<8xf32>
    %80 = vector.shape_cast %79 : vector<8xf32> to vector<8x1xf32>
    %81 = vector.broadcast %80 : vector<8x1xf32> to vector<8x8xf32>
    %82 = arith.divf %78, %81 : vector<8x8xf32>
    %cst_39 = arith.constant 0.000000e+00 : f32
    %83 = vector.broadcast %cst_39 : f32 to vector<8x8xf32>
    %84 = arith.select %16, %83, %82 : vector<8x8xi1>, vector<8x8xf32>
    %cst_40 = arith.constant dense<0.000000e+00> : vector<8x8xf32>
    %85 = tpu.matmul %84, %54, %cst_40 {dimension_numbers = #tpu.dot_dimension_numbers<[1], [0], [0], [1], [0, 0, 1, 1], [], []>} : vector<8x8xf32>, vector<8x8xf32>, vector<8x8xf32> -> vector<8x8xf32>
    %86 = vector.extract_strided_slice %6 {offsets = [0, 16], sizes = [8, 8], strides = [1, 1]} : vector<8x96xf32> to vector<8x8xf32>
    %87 = vector.extract_strided_slice %6 {offsets = [0, 48], sizes = [8, 8], strides = [1, 1]} : vector<8x96xf32> to vector<8x8xf32>
    %88 = vector.extract_strided_slice %6 {offsets = [0, 80], sizes = [8, 8], strides = [1, 1]} : vector<8x96xf32> to vector<8x8xf32>
    %89 = vector.extract_strided_slice %12 {offsets = [0, 16], sizes = [32, 8], strides = [1, 1]} : vector<32x64xf32> to vector<32x8xf32>
    %90 = vector.extract_strided_slice %12 {offsets = [0, 48], sizes = [32, 8], strides = [1, 1]} : vector<32x64xf32> to vector<32x8xf32>
    %cst_41 = arith.constant dense<0.000000e+00> : vector<8x8xf32>
    %91 = tpu.matmul %86, %87, %cst_41 {dimension_numbers = #tpu.dot_dimension_numbers<[1], [1], [0], [0], [0, 0, 1, 0], [], []>} : vector<8x8xf32>, vector<8x8xf32>, vector<8x8xf32> -> vector<8x8xf32>
    %cst_42 = arith.constant dense<0.000000e+00> : vector<8x32xf32>
    %92 = tpu.matmul %86, %89, %cst_42 {dimension_numbers = #tpu.dot_dimension_numbers<[1], [1], [0], [0], [0, 0, 1, 0], [], []>} : vector<8x8xf32>, vector<32x8xf32>, vector<8x32xf32> -> vector<8x32xf32>
    %cst_43 = arith.constant dense<0.000000e+00> : vector<8x32xf32>
    %93 = tpu.matmul %87, %90, %cst_43 {dimension_numbers = #tpu.dot_dimension_numbers<[1], [1], [0], [0], [0, 0, 1, 0], [], []>} : vector<8x8xf32>, vector<32x8xf32>, vector<8x32xf32> -> vector<8x32xf32>
    %94 = vector.shape_cast %92 : vector<8x32xf32> to vector<8x1x32xf32>
    %95 = vector.broadcast %94 : vector<8x1x32xf32> to vector<8x8x32xf32>
    %96 = arith.mulf %95, %17 : vector<8x8x32xf32>
    %cst_44 = arith.constant dense<0.000000e+00> : vector<8x8xf32>
    %97 = vector.multi_reduction <add>, %96, %cst_44 [2] : vector<8x8x32xf32> to vector<8x8xf32>
    %98 = vector.shape_cast %93 : vector<8x32xf32> to vector<1x8x32xf32>
    %99 = vector.broadcast %98 : vector<1x8x32xf32> to vector<8x8x32xf32>
    %100 = arith.mulf %99, %17 : vector<8x8x32xf32>
    %cst_45 = arith.constant dense<0.000000e+00> : vector<8x8xf32>
    %101 = vector.multi_reduction <add>, %100, %cst_45 [2] : vector<8x8x32xf32> to vector<8x8xf32>
    %102 = arith.addf %91, %97 : vector<8x8xf32>
    %103 = arith.addf %102, %101 : vector<8x8xf32>
    %cst_46 = arith.constant 0.204124153 : f32
    %104 = vector.broadcast %cst_46 : f32 to vector<8x8xf32>
    %105 = arith.mulf %103, %104 : vector<8x8xf32>
    %cst_47 = arith.constant -3.40282347E+38 : f32
    %106 = vector.broadcast %cst_47 : f32 to vector<8x8xf32>
    %107 = arith.select %16, %106, %105 : vector<8x8xi1>, vector<8x8xf32>
    %cst_48 = arith.constant dense<0xFF800000> : vector<8xf32>
    %108 = vector.multi_reduction <maximumf>, %107, %cst_48 [1] : vector<8x8xf32> to vector<8xf32>
    %109 = vector.shape_cast %108 : vector<8xf32> to vector<8x1xf32>
    %110 = vector.broadcast %109 : vector<8x1xf32> to vector<8x8xf32>
    %111 = arith.subf %107, %110 : vector<8x8xf32>
    %112 = math.exp %111 : vector<8x8xf32>
    %cst_49 = arith.constant dense<0.000000e+00> : vector<8xf32>
    %113 = vector.multi_reduction <add>, %112, %cst_49 [1] : vector<8x8xf32> to vector<8xf32>
    %114 = vector.shape_cast %113 : vector<8xf32> to vector<8x1xf32>
    %115 = vector.broadcast %114 : vector<8x1xf32> to vector<8x8xf32>
    %116 = arith.divf %112, %115 : vector<8x8xf32>
    %cst_50 = arith.constant 0.000000e+00 : f32
    %117 = vector.broadcast %cst_50 : f32 to vector<8x8xf32>
    %118 = arith.select %16, %117, %116 : vector<8x8xi1>, vector<8x8xf32>
    %cst_51 = arith.constant dense<0.000000e+00> : vector<8x8xf32>
    %119 = tpu.matmul %118, %88, %cst_51 {dimension_numbers = #tpu.dot_dimension_numbers<[1], [0], [0], [1], [0, 0, 1, 1], [], []>} : vector<8x8xf32>, vector<8x8xf32>, vector<8x8xf32> -> vector<8x8xf32>
    %120 = vector.extract_strided_slice %6 {offsets = [0, 24], sizes = [8, 8], strides = [1, 1]} : vector<8x96xf32> to vector<8x8xf32>
    %121 = vector.extract_strided_slice %6 {offsets = [0, 56], sizes = [8, 8], strides = [1, 1]} : vector<8x96xf32> to vector<8x8xf32>
    %122 = vector.extract_strided_slice %6 {offsets = [0, 88], sizes = [8, 8], strides = [1, 1]} : vector<8x96xf32> to vector<8x8xf32>
    %123 = vector.extract_strided_slice %12 {offsets = [0, 24], sizes = [32, 8], strides = [1, 1]} : vector<32x64xf32> to vector<32x8xf32>
    %124 = vector.extract_strided_slice %12 {offsets = [0, 56], sizes = [32, 8], strides = [1, 1]} : vector<32x64xf32> to vector<32x8xf32>
    %cst_52 = arith.constant dense<0.000000e+00> : vector<8x8xf32>
    %125 = tpu.matmul %120, %121, %cst_52 {dimension_numbers = #tpu.dot_dimension_numbers<[1], [1], [0], [0], [0, 0, 1, 0], [], []>} : vector<8x8xf32>, vector<8x8xf32>, vector<8x8xf32> -> vector<8x8xf32>
    %cst_53 = arith.constant dense<0.000000e+00> : vector<8x32xf32>
    %126 = tpu.matmul %120, %123, %cst_53 {dimension_numbers = #tpu.dot_dimension_numbers<[1], [1], [0], [0], [0, 0, 1, 0], [], []>} : vector<8x8xf32>, vector<32x8xf32>, vector<8x32xf32> -> vector<8x32xf32>
    %cst_54 = arith.constant dense<0.000000e+00> : vector<8x32xf32>
    %127 = tpu.matmul %121, %124, %cst_54 {dimension_numbers = #tpu.dot_dimension_numbers<[1], [1], [0], [0], [0, 0, 1, 0], [], []>} : vector<8x8xf32>, vector<32x8xf32>, vector<8x32xf32> -> vector<8x32xf32>
    %128 = vector.shape_cast %126 : vector<8x32xf32> to vector<8x1x32xf32>
    %129 = vector.broadcast %128 : vector<8x1x32xf32> to vector<8x8x32xf32>
    %130 = arith.mulf %129, %17 : vector<8x8x32xf32>
    %cst_55 = arith.constant dense<0.000000e+00> : vector<8x8xf32>
    %131 = vector.multi_reduction <add>, %130, %cst_55 [2] : vector<8x8x32xf32> to vector<8x8xf32>
    %132 = vector.shape_cast %127 : vector<8x32xf32> to vector<1x8x32xf32>
    %133 = vector.broadcast %132 : vector<1x8x32xf32> to vector<8x8x32xf32>
    %134 = arith.mulf %133, %17 : vector<8x8x32xf32>
    %cst_56 = arith.constant dense<0.000000e+00> : vector<8x8xf32>
    %135 = vector.multi_reduction <add>, %134, %cst_56 [2] : vector<8x8x32xf32> to vector<8x8xf32>
    %136 = arith.addf %125, %131 : vector<8x8xf32>
    %137 = arith.addf %136, %135 : vector<8x8xf32>
    %cst_57 = arith.constant 0.204124153 : f32
    %138 = vector.broadcast %cst_57 : f32 to vector<8x8xf32>
    %139 = arith.mulf %137, %138 : vector<8x8xf32>
    %cst_58 = arith.constant -3.40282347E+38 : f32
    %140 = vector.broadcast %cst_58 : f32 to vector<8x8xf32>
    %141 = arith.select %16, %140, %139 : vector<8x8xi1>, vector<8x8xf32>
    %cst_59 = arith.constant dense<0xFF800000> : vector<8xf32>
    %142 = vector.multi_reduction <maximumf>, %141, %cst_59 [1] : vector<8x8xf32> to vector<8xf32>
    %143 = vector.shape_cast %142 : vector<8xf32> to vector<8x1xf32>
    %144 = vector.broadcast %143 : vector<8x1xf32> to vector<8x8xf32>
    %145 = arith.subf %141, %144 : vector<8x8xf32>
    %146 = math.exp %145 : vector<8x8xf32>
    %cst_60 = arith.constant dense<0.000000e+00> : vector<8xf32>
    %147 = vector.multi_reduction <add>, %146, %cst_60 [1] : vector<8x8xf32> to vector<8xf32>
    %148 = vector.shape_cast %147 : vector<8xf32> to vector<8x1xf32>
    %149 = vector.broadcast %148 : vector<8x1xf32> to vector<8x8xf32>
    %150 = arith.divf %146, %149 : vector<8x8xf32>
    %cst_61 = arith.constant 0.000000e+00 : f32
    %151 = vector.broadcast %cst_61 : f32 to vector<8x8xf32>
    %152 = arith.select %16, %151, %150 : vector<8x8xi1>, vector<8x8xf32>
    %cst_62 = arith.constant dense<0.000000e+00> : vector<8x8xf32>
    %153 = tpu.matmul %152, %122, %cst_62 {dimension_numbers = #tpu.dot_dimension_numbers<[1], [0], [0], [1], [0, 0, 1, 1], [], []>} : vector<8x8xf32>, vector<8x8xf32>, vector<8x8xf32> -> vector<8x8xf32>
    %154 = tpu.concatenate %51, %85, %119, %153 in 1 : vector<8x8xf32>, vector<8x8xf32>, vector<8x8xf32>, vector<8x8xf32> -> vector<8x32xf32>
    %c0_63 = arith.constant 0 : index
    %c0_64 = arith.constant 0 : index
    %c0_65 = arith.constant 0 : index
    %155 = vector.load %arg9[%c0_63, %c0_64, %c0_65] : memref<1x8x32xf32, #tpu.memory_space<vmem>>, vector<1x8x32xf32>
    %156 = vector.shape_cast %155 : vector<1x8x32xf32> to vector<8x32xf32>
    %157 = vector.shape_cast %154 : vector<8x32xf32> to vector<1x8x32xf32>
    tpu.vector_store %arg9[%c0_63, %c0_64, %c0_65], %157 {strides = array<i32>} : memref<1x8x32xf32, #tpu.memory_space<vmem>>, vector<1x8x32xf32>,
    return
  }
  func.func @transform_0(%arg0: i32) -> (i32, i32, i32) {
    %c0_i32 = arith.constant 0 : i32
    %c0_i32_0 = arith.constant 0 : i32
    %c0_i32_1 = arith.constant 0 : i32
    return %arg0, %c0_i32, %c0_i32_0 : i32, i32, i32
  }
  func.func @transform_1(%arg0: i32) -> (i32, i32, i32) {
    %c0_i32 = arith.constant 0 : i32
    %c0_i32_0 = arith.constant 0 : i32
    %c0_i32_1 = arith.constant 0 : i32
    return %arg0, %c0_i32, %c0_i32_0 : i32, i32, i32
  }
  func.func @transform_2(%arg0: i32) -> (i32, i32) {
    %c0_i32 = arith.constant 0 : i32
    %c0_i32_0 = arith.constant 0 : i32
    %c0_i32_1 = arith.constant 0 : i32
    return %c0_i32, %c0_i32_0 : i32, i32
  }
  func.func @transform_3(%arg0: i32) -> (i32, i32) {
    %c0_i32 = arith.constant 0 : i32
    %c0_i32_0 = arith.constant 0 : i32
    %c0_i32_1 = arith.constant 0 : i32
    return %c0_i32, %c0_i32_0 : i32, i32
  }
  func.func @transform_4(%arg0: i32) -> (i32, i32) {
    %c0_i32 = arith.constant 0 : i32
    %c0_i32_0 = arith.constant 0 : i32
    %c0_i32_1 = arith.constant 0 : i32
    return %c0_i32, %c0_i32_0 : i32, i32
  }
  func.func @transform_5(%arg0: i32) -> (i32, i32) {
    %c0_i32 = arith.constant 0 : i32
    %c0_i32_0 = arith.constant 0 : i32
    %c0_i32_1 = arith.constant 0 : i32
    return %c0_i32, %c0_i32_0 : i32, i32
  }
  func.func @transform_6(%arg0: i32) -> (i32, i32) {
    %c0_i32 = arith.constant 0 : i32
    %c0_i32_0 = arith.constant 0 : i32
    %c0_i32_1 = arith.constant 0 : i32
    return %c0_i32, %c0_i32_0 : i32, i32
  }
  func.func @transform_7(%arg0: i32) -> (i32, i32, i32) {
    %c0_i32 = arith.constant 0 : i32
    %c0_i32_0 = arith.constant 0 : i32
    %c0_i32_1 = arith.constant 0 : i32
    %c0_i32_2 = arith.constant 0 : i32
    return %c0_i32, %c0_i32_0, %c0_i32_1 : i32, i32, i32
  }
  func.func @transform_8(%arg0: i32) -> (i32, i32, i32) {
    %c0_i32 = arith.constant 0 : i32
    %c0_i32_0 = arith.constant 0 : i32
    %c0_i32_1 = arith.constant 0 : i32
    return %arg0, %c0_i32, %c0_i32_0 : i32, i32, i32
  }
}

</mosaic_0001>

<bundles_post_ra>
// kernel: tpu_custom_call.1
= control target key start
LH: loop header
LB: loop body
LE: loop exit
PB: predicated region body
PF: predicated region fallthrough
CT: control target
= control target key end

     0   :  { %s3045_s0 = inlined_call_operand.hbm [shape: f32[2,8,32], index: 0, kind: input, shape index: {}]   ;;  %s3046_s1 = inlined_call_operand.hbm [shape: s32[2,8,8], index: 1, kind: input, shape index: {}]   ;;  %s3047_s2 = inlined_call_operand.hbm [shape: f32[32,96], index: 2, kind: input, shape index: {}]   ;;  %s3048_s3 = inlined_call_operand.vmem [shape: f32[1,96], index: 3, kind: input, shape index: {}]   ;;  %s3049_s4 = inlined_call_operand.hbm [shape: f32[32,64], index: 4, kind: input, shape index: {}]   ;;  %s3050_s5 = inlined_call_operand.vmem [shape: f32[1,64], index: 5, kind: input, shape index: {}]   ;;  %s3051_s6 = inlined_call_operand.hbm [shape: f32[32,32], index: 6, kind: input, shape index: {}]   ;;  %s3052_s7 = inlined_call_operand.hbm [shape: f32[8,8,32], index: 7, kind: input, shape index: {}]   ;;  %s3053_s8 = inlined_call_operand.hbm [shape: f32[2,8,32], index: 8, kind: output, shape index: {}]  }
   0x1   :  { %3057 = sst [smem:[#allocation23_spill]] %s3047_s2 }
   0x2   :  { %3058 = sst [smem:[#allocation24_spill]] %s3049_s4 }
   0x3   :  { %3059 = sst [smem:[#allocation25_spill]] %s3051_s6 }
   0x4   :  { %3060 = sst [smem:[#allocation26_spill]] %s3052_s7 }
   0x5   :  { %13 = vsyncpa [#allocation3], 0 }
   0x6   :  { %15 = vsyncpa [#allocation3 + $0x1], 0 }
   0x7   :  { %16 = vsyncpa [#allocation6], 0 }
   0x8   :  { %18 = vsyncpa [#allocation6 + $0x1], 0 }
   0x9   :  { %19 = vsyncpa [#allocation9], 0 }
   0xa   :  { %20 = vsyncpa [#allocation12], 0 }
   0xb   :  { %21 = vsyncpa [#allocation4], 0 }
   0xc   :  { %23 = vsyncpa [#allocation4 + $0x1], 0  ;;  %s2397_s27 = smov 0   ;;  %s2399_s28 = smov 0  }
   0xd   :  { %s2401_s29 = smov 0   ;;  %s2403_s30 = smov 0  }
   0xe LB: > { %3061 = sst [smem:[#allocation20_spill]] %s2326_s29  ;;  %s2421_s12 = sadd.s32 4294967295, %s2330_s30   ;;  %s2330_s30 = sphi %s2403_s30, %s3076_s30   ;;  %s2326_s29 = sphi %s2401_s29, %s3078_s29   ;;  %s2322_s28 = sphi %s2399_s28, %s3080_s28   ;;  %s2318_s27 = sphi %s2397_s27, %s3079_s27  }
   0xf   : > { %s3062_s2 = sld [smem:[#allocation23_spill]]  ;;  %p1855_p0 = scmp.ge.s32.totalorder %s2330_s30, 1 }
  0x10   : > { %p50_p1 = scmp.eq.s32.totalorder %s2421_s12, 0  ;;  %p238_p2 = scmp.lt.s32.totalorder %s2330_s30, 3 }
  0x11   : > { %s2332_s14 = smov [#allocation7]   ;;  %s3064_s4 = sld [smem:[#allocation24_spill]] }
  0x12   : > { %p2426_p3 = pnand %p1855_p0, %p238_p2  ;;  %s251_s15 = sshll.u32 %s2332_s14, 4  ;;  %s252_s15 = int_to_ptr.vmem [resolvable:$true] %s251_s15 }
  0x13   : > { %s3066_s6 = sld [smem:[#allocation25_spill]]  ;;  %s2333_s23 = smov [#allocation8]  }
  0x14   : > { %p1956_p4 = pneg %p2426_p3  ;;  %s268_s24 = sshll.u32 %s2333_s23, 4  ;;  %s269_s24 = int_to_ptr.vmem [resolvable:$true] %s268_s24 }
  0x15   : > { %s249_s11 = sshll.u32 %s3062_s2, 4  ;;  %s2334_s25 = smov 128   ;;  %s250_s11 = int_to_ptr.hbm [resolvable:$true] %s249_s11 }
  0x16   : > { %p2438_p6 = pnand %p1956_p4, %p50_p1  ;;  %s2335_s26 = smov 8  }
  0x17   : > { %s266_s18 = sshll.u32 %s3064_s4, 4  ;;  %s3067_s7 = sld [smem:[#allocation26_spill]]  ;;  %s267_s18 = int_to_ptr.hbm [resolvable:$true] %s266_s18 }
  0x18   : > { %1959 = dma.hbm_to_vmem [thread:$0]  (!%p2438_p6), %s250_s11, 512, %s252_s15, [#allocation6], %s2334_s25, %s2334_s25, %s2335_s26  }
  0x19   : > { %s283_s22 = sshll.u32 %s3066_s6, 4  ;;  %s2336_s16 = smov [#allocation10]   ;;  %s284_s22 = int_to_ptr.hbm [resolvable:$true] %s283_s22 }
  0x1a   : > { %1962 = dma.hbm_to_vmem [thread:$0]  (!%p2438_p6), %s267_s18, 512, %s269_s24, [#allocation9], %s2334_s25, %s2334_s25, %s2335_s26  }
  0x1b   : > { %s285_s17 = sshll.u32 %s2336_s16, 4  ;;  %s2337_s11 = smov [#allocation11]   ;;  %s286_s17 = int_to_ptr.vmem [resolvable:$true] %s285_s17 }
  0x1c   : > { %1965 = dma.hbm_to_vmem [thread:$0]  (!%p2438_p6), %s284_s22, 512, %s286_s17, [#allocation9], %s2334_s25, %s2334_s25, %s2335_s26  }
  0x1d   : > { %s297_s14 = sshll.u32 %s3067_s7, 4  ;;  %s299_s15 = sshll.u32 %s2337_s11, 4  ;;  %s298_s14 = int_to_ptr.hbm [resolvable:$true] %s297_s14  ;;  %s300_s15 = int_to_ptr.vmem [resolvable:$true] %s299_s15 }
  0x1e   : > { %1968 = dma.hbm_to_vmem [thread:$0]  (!%p2438_p6), %s298_s14, 1024, %s300_s15, [#allocation12], %s2334_s25, %s2334_s25, %s2335_s26  }
  0x1f   : > { %s1854_s18 = sadd.s32 4294967294, %s2330_s30   ;;  %s2458_s20 = sadd.s32 1, %s2330_s30  }
  0x20   : > { %3068 = sst [smem:[#allocation21_spill]] %s2458_s20  ;;  %s33_s21 = ssub.s32 %s2330_s30, %s2458_s20 }
  0x21   : > { %s36_s23 = sadd.s32 1, %s2326_s29  ;;  %p34_p7 = scmp.eq.s32.totalorder %s33_s21, 0 }
  0x22   : > { %p43_p8 = scmp.ne.s32.totalorder %s2326_s29, %s2322_s28  ;;  %p44_p9 = scmp.eq.s32.totalorder %s2330_s30, 0 }
  0x23   : > { %p49_p10 = scmp.ne.s32.totalorder %s2322_s28, %s2318_s27  ;;  %p225_p13 = scmp.eq.s32.totalorder %s2421_s12, 1 }
  0x24   : > { %s2469_s22 = scalar_select %p34_p7, %s2326_s29, %s36_s23  }
  0x25   : > { %p2471_p11 = por %p44_p9, %p43_p8  ;;  %p2477_p12 = por %p50_p1, %p49_p10 }
  0x26   : > { %3069 = sst [smem:[#allocation22_spill]] %s2469_s22  ;;  %p231_p0 = scmp.eq.s32.totalorder %s1854_s18, 1 }
  0x27   : > { %p1984_p2 = scmp.lt.s32.totalorder %s2330_s30, 2  ;;  %s313_s25 = sand.u32 1, %s2326_s29  }
  0x28   : > { %p2484_p4 = por %p225_p13, %p43_p8  ;;  %p2488_p6 = por %p231_p0, %p49_p10 }
  0x29   : > { %s2492_s10 = sshll.u32 %s313_s25, 3  ;;  %s1862_s14 = sshll.u32 %s2330_s30, 3 }
  0x2a   : > { %s321_s11 = scalar_lea.hbm %s3045_s0, %s1862_s14  ;;  %s317_s15 = scalar_lea.vmem [#allocation2], %s2492_s10 }
  0x2b   : > { %s325_s18 = sshll.u32 %s317_s15, 4  ;;  %s323_s21 = sshll.u32 %s321_s11, 4  ;;  %s326_s18 = int_to_ptr.vmem [resolvable:$true] %s325_s18  ;;  %s324_s21 = int_to_ptr.hbm [resolvable:$true] %s323_s21 }
  0x2c   : > { %p2501_p7 = pnand %p1984_p2, %p2471_p11  ;;  %s340_s6 = scalar_lea.hbm %s3046_s1, %s1862_s14 }
  0x2d   : > { %s332_s7 = sand.u32 1, %s2330_s30   ;;  %s314_s22 = scalar_lea.sflag [#allocation3], %s313_s25 }
  0x2e   : > { %s2188_s16 = sshra.s32 %s324_s21, 4  ;;  %p2192_p9 = pneg %p2501_p7  ;;  %s2189_s16 = int_to_ptr.hbm [resolvable:$true] %s2188_s16 }
  0x2f   : > { %s2190_s17 = scalar_lea.hbm %s2189_s16, 8  ;;  %s2195_s15 = scalar_lea.hbm %s3045_s0, 16 }
  0x30   : > { %p2191_p8 = scmp.ne.s32.totalorder %s2189_s16, %s2190_s17  ;;  %p2196_p13 = scmp.lt.s32.totalorder %s2189_s16, %s3045_s0 }
  0x31   : > { %p2197_p0 = scmp.lt.s32.totalorder %s2195_s15, %s2190_s17 }
  0x32   : > { %p2193_p10 = pnand %p2192_p9, %p2191_p8 }
  0x33   : > { %p2198_p2 = por %p2197_p0, %p2196_p13 }
  0x34   : > { %p2194_p11 = pneg %p2193_p10 }
  0x36   : > { %p2199_p5 = pnand %p2198_p2, %p2194_p11 }
  0x38   : > { %2202 = shalt.err (!%p2199_p5)
}
  0x39   : > { %1972 = dma.hbm_to_vmem [thread:$0]  (!%p2501_p7), %s324_s21, 128, %s326_s18, %s314_s22  }
  0x3a   : > { %s342_s25 = sshll.u32 %s340_s6, 4  ;;  %s336_s14 = scalar_lea.vmem [#allocation5], %s2492_s10  ;;  %s343_s25 = int_to_ptr.hbm [resolvable:$true] %s342_s25 }
  0x3b   : > { %s344_s29 = sshll.u32 %s336_s14, 4  ;;  %s333_s24 = scalar_lea.sflag [#allocation6], %s332_s7  ;;  %s345_s29 = int_to_ptr.vmem [resolvable:$true] %s344_s29 }
  0x3c   : > { %s2218_s11 = sshra.s32 %s343_s25, 4  ;;  %s2225_s15 = scalar_lea.hbm %s3046_s1, 16  ;;  %s2219_s11 = int_to_ptr.hbm [resolvable:$true] %s2218_s11 }
  0x3d   : > { %s2220_s20 = scalar_lea.hbm %s2219_s11, 8  ;;  %p2226_p5 = scmp.lt.s32.totalorder %s2219_s11, %s3046_s1 }
  0x3e   : > { %p2221_p8 = scmp.ne.s32.totalorder %s2219_s11, %s2220_s20  ;;  %p2227_p13 = scmp.lt.s32.totalorder %s2225_s15, %s2220_s20 }
  0x40   : > { %p2223_p10 = pnand %p2221_p8, %p2192_p9  ;;  %p2228_p0 = por %p2227_p13, %p2226_p5 }
  0x42   : > { %p2224_p11 = pneg %p2223_p10 }
  0x44   : > { %p2229_p2 = pnand %p2228_p0, %p2224_p11 }
  0x46   : > { %2232 = shalt.err (!%p2229_p2)
}
  0x47   : > { %1975 = dma.hbm_to_vmem [thread:$0]  (!%p2501_p7), %s343_s25, 128, %s345_s29, %s333_s24  }
  0x48   : > { %353 = sbr.rel (%p2426_p3) target bundleno = 2045 (0x7fd), region = 52  ;;  %s2537_s6 = sand.u32 (!%p2426_p3), 1, %s2322_s28  }
  0x49   : > { %s2540_s7 = sshll.u32 (!%p2426_p3), %s2537_s6, 3  ;;  %s356_s10 = scalar_lea.sflag (!%p2426_p3), [#allocation3], %s2537_s6 }
  0x4a   : > { %s359_s20 = scalar_lea.vmem (!%p2426_p3), [#allocation2], %s2540_s7 }
  0x4d   : > { %2293 = dma.done.wait (%p2477_p12), %s356_s10, 128  }
  0x4e   : > { %2295 = vsyncadd (%p2477_p12), %s356_s10, 4294967168  ;;  %s365_s29 = sand.u32 1, %s2421_s12   ;;  %s369_s18 = scalar_lea.vmem [#allocation5], %s2540_s7 }
  0x4f   : > { %s366_s13 = scalar_lea.sflag [#allocation6], %s365_s29 }
  0x50   : > { %2297 = dma.done.wait (%p2477_p12), %s366_s13, 128  }
  0x51   : > { %2299 = vsyncadd (%p2477_p12), %s366_s13, 4294967168 }
  0x52   : > { %2301 = dma.done.wait (%p50_p1), [#allocation6], 512  }
  0x53   : > { %2303 = vsyncadd (%p50_p1), [#allocation6], 4294966784 }
  0x54   : > { %2305 = dma.done.wait (%p50_p1), [#allocation9], 1024  }
  0x55   : > { %2307 = vsyncadd (%p50_p1), [#allocation9], 4294966272 }
  0x56   : > { %2309 = dma.done.wait (%p50_p1), [#allocation12], 1024  }
  0x57   : > { %2311 = vsyncadd (%p50_p1), [#allocation12], 4294966272  ;;  %v432_v0 = vld [vmem:[#allocation7 + $0x18] sm:$0xff]  ;;  %v431_v2 = vld [vmem:[#allocation7 + $0x10] sm:$0xff]  ;;  %vm437_vm0 = vcmask 261120   ;;  %s2338_s23 = smov 96  }
  0x58   : > { %v468_v1 = vld [vmem:[#allocation8 + $0x18] sm:$0xff]  ;;  %453 = vmatpush.msra.mxu0 %v432_v0  ;;  %v467_v3 = vld [vmem:[#allocation8 + $0x10] sm:$0xff]  ;;  %v430_v4 = vld [vmem:[#allocation7 + $0x8] sm:$0xff]  ;;  %vm524_vm1 = vcmask 64512   ;;  %s2339_s14 = smov 120   ;;  %s2340_s24 = smov 88  }
  0x59   : > { %497 = vmatpush.msra.mxu1 %v468_v1  ;;  %v466_v5 = vld [vmem:[#allocation8 + $0x8] sm:$0xff]  ;;  %v429_v6 = vld [vmem:[#allocation7] sm:$0xff]  ;;  %v463_v11 = vld [vmem:[#allocation10 + $0x10] sm:$0xff]  ;;  %s2341_s11 = smov 112   ;;  %s2342_s16 = smov 80   ;;  %vm706_vm2 = vcmask 1041409  }
  0x5a   : > { %454 = vmatpush.msra.mxu0 %v431_v2  ;;  %v465_v7 = vld [vmem:[#allocation8] sm:$0xff]  ;;  %v462_v10 = vld [vmem:[#allocation10 + $0x8] sm:$0xff]  ;;  %v464_v12 = vld [vmem:[#allocation10 + $0x18] sm:$0xff]  ;;  %vm708_vm3 = vcmask 1042434   ;;  %vm710_vm4 = vcmask 1043459   ;;  %vm712_vm5 = vcmask 1044484  }
  0x5b   : > { %498 = vmatpush.msra.mxu1 %v467_v3  ;;  %v428_v8 = vld [vmem:[%s359_s20] sm:$0xff]  ;;  %v2621_v39 = vld [vmem:[#allocation11 + $0x10] sm:$0xff]  ;;  %v2626_v47 = vld [vmem:[#allocation11 + $0x18] sm:$0xff]  ;;  %vm714_vm6 = vcmask 1045509   ;;  %vm716_vm7 = vcmask 1046534   ;;  %vm718_vm8 = vcmask 1047559  }
  0x5c   : > { %455 = vmatpush.msra.mxu0 %v430_v4  ;;  %v461_v9 = vld [vmem:[#allocation10] sm:$0xff]  ;;  %v2623_v40 = vld [vmem:[#allocation11 + $0x8] sm:$0xff]  ;;  %v2641_v0 = vld [vmem:[#allocation11 + $0x30] sm:$0xff]  ;;  %s2343_s17 = smov 64   ;;  %s2344_s15 = smov 72  }
  0x5d   : > { %499 = vmatpush.msra.mxu1 %v466_v5  ;;  %v2042_v13 = vld [vmem:[%s3048_s3] ss:$0 sm:$0xff]  ;;  %v2633_v54 = vld [vmem:[#allocation11 + $0x28] sm:$0xff]  ;;  %v2645_v4 = vld [vmem:[#allocation11 + $0x38] sm:$0xff]  ;;  %s2345_s2 = smov 104   ;;  %s2346_s22 = smov 56  }
  0x5e   : > { %456 = vmatpush.msra.mxu0 %v429_v6  ;;  %v2043_v17 = vld [vmem:[%s3050_s5] ss:$0 sm:$0xff]  ;;  %s2347_s10 = smov 48   ;;  %s2348_s20 = smov 40  }
  0x5f   : > { %500 = vmatpush.msra.mxu1 %v465_v7  ;;  %1873 = vmatmul.msk.f32.vlgmr.msra.gmra.mxu0 %vm437_vm0, %v428_v8  ;;  %v2619_v34 = vld [vmem:[#allocation11] sm:$0xff]  ;;  %s2349_s29 = smov 8   ;;  %s2350_s13 = smov 16  }
  0x60   : > { %1874 = vmatmul.msk.f32.vlgmr.msra.gmra.mxu1 %vm437_vm0, %v461_v9  ;;  %v2631_v53 = vld [vmem:[#allocation11 + $0x20] sm:$0xff]  ;;  %s1931_s19 = sshll.u32 %s2421_s12, 3  ;;  %s427_s25 = scalar_lea.vmem [#allocation13], %s2540_s7 }
  0x61   : > { %s1718_s4 = scalar_lea.hbm %s3053_s8, %s1931_s19  ;;  %s1708_s12 = scalar_lea.sflag [#allocation4], %s2537_s6 }
  0x68   : > { %1875 = vmatmul.msk.f32.gmra.mxu1 %vm437_vm0, %v462_v10 }
  0x70   : > { %1876 = vmatmul.msk.f32.gmra.mxu1 %vm437_vm0, %v463_v11 }
  0x78   : > { %1877 = vmatmul.msk.f32.gmra.mxu1 %vm437_vm0, %v464_v12 }
  0xdc   : > { %v458_v14 = vpop.f32.mrf.mxu0 }
  0xdd   : > { %v502_v15 = vpop.f32.mrf.mxu1  ;;  %v2574_v16 = vadd.f32 %v2042_v13, %v458_v14 }
  0xde   : > { %v2583_v21 = vadd.f32 %v2043_v17, %v502_v15 }
  0xdf   : > { %560 = vrot.lane.b32.xlu2 %v2574_v16, %s2338_s23 }
  0xe5   : > { %v505_v18 = vpop.f32.mrf.mxu1 }
  0xe6   : > { %v2580_v19 = vadd.f32 %v2043_v17, %v505_v18 }
  0xe8   : > { %564 = vrot.lane.b32.xlu1 %v2580_v19, %s2338_s23 }
  0xed   : > { %v508_v20 = vpop.f32.mrf.mxu1 }
  0xee   : > { %v2588_v24 = vadd.f32 %v2043_v17, %v508_v20 }
  0xf0   : > { %562 = vrot.lane.b32.xlu1 %v2583_v21, %s2338_s23 }
  0xf5   : > { %v511_v22 = vpop.f32.mrf.mxu1 }
  0xf6   : > { %v2586_v23 = vadd.f32 %v2043_v17, %v511_v22 }
  0xf8   : > { %568 = vrot.lane.b32.xlu0 %v2586_v23, %s2338_s23  ;;  %1878 = vmatpush.xpose.msk.msra.mxu2 %vm524_vm1, %v2586_v23 }
  0xf9   : > { %825 = vrot.lane.b32.xlu1 %v2588_v24, %s2339_s14  ;;  %867 = vrot.lane.b32.xlu2 %v2586_v23, %s2340_s24 }
  0xfc   : > { %1879 = vmatpush.xpose.msk.msra.mxu2 %vm524_vm1, %v2588_v24 }
 0x100   : > { %566 = vrot.lane.b32.xlu0 %v2588_v24, %s2338_s23  ;;  %1880 = vmatpush.xpose.msk.msra.mxu2 %vm524_vm1, %v2580_v19 }
 0x104   : > { %1881 = vmatpush.xpose.msk.msra.mxu2 %vm524_vm1, %v2583_v21 }
 0x107   : > { %1882 = vmatmul.msk.f32.vlgmr.msra.gmra.mxu2 %vm524_vm1, %v2574_v16 }
 0x108   : > { %827 = vrot.lane.b32.xlu0 %v2586_v23, %s2339_s14 }
 0x139   : > { %v561_v25 = vpop.permute.xlu2 %560 }
 0x13a   : > { %1888 = vmatpush.xpose.msk.msrb.mxu0 %vm524_vm1, %v561_v25 }
 0x13d   : > { %1889 = vmatmul.msk.f32.vlgmr.msrb.gmra.mxu0 %vm524_vm1, %v2574_v16 }
 0x153   : > { %v868_v31 = vpop.permute.xlu2 %867 }
 0x15a   : > { %v565_v26 = vpop.permute.xlu1 %564 }
 0x162   : > { %v563_v29 = vpop.permute.xlu1 %562 }
 0x16a   : > { %v569_v27 = vpop.permute.xlu0 %568 }
 0x16b   : > { %1883 = vmatpush.xpose.msk.msra.mxu3 %vm524_vm1, %v569_v27  ;;  %v826_v32 = vpop.permute.xlu1 %825 }
 0x172   : > { %v567_v28 = vpop.permute.xlu0 %566 }
 0x173   : > { %1884 = vmatpush.xpose.msk.msra.mxu3 %vm524_vm1, %v567_v28 }
 0x177   : > { %1885 = vmatpush.xpose.msk.msra.mxu3 %vm524_vm1, %v565_v26 }
 0x17a   : > { %v828_v30 = vpop.permute.xlu0 %827 }
 0x17b   : > { %1886 = vmatpush.xpose.msk.msra.mxu3 %vm524_vm1, %v563_v29  ;;  %1891 = vmatpush.xpose.msk.msrb.mxu2 %vm524_vm1, %v828_v30 }
 0x17e   : > { %1887 = vmatmul.msk.f32.vlgmr.msra.gmra.mxu3 %vm524_vm1, %v561_v25 }
 0x17f   : > { %1896 = vmatpush.xpose.msk.msrb.mxu3 %vm524_vm1, %v868_v31  ;;  %1892 = vmatpush.xpose.msk.msrb.mxu2 %vm524_vm1, %v826_v32 }
 0x18a   : > { %v557_v33 = vpop.f32.mrf.mxu2 }
 0x18b   : > { %v608_v35 = vperm.slane %v557_v33, 0  ;;  %v602_v36 = vrot.slane %v557_v33, 2  ;;  %v601_v37 = vrot.slane %v557_v33, 1  ;;  %v603_v38 = vrot.slane %v557_v33, 3 }
 0x18c   : > { %v604_v41 = vrot.slane %v557_v33, 4  ;;  %v605_v42 = vrot.slane %v557_v33, 5  ;;  %v606_v58 = vrot.slane %v557_v33, 6  ;;  %v607_v61 = vrot.slane %v557_v33, 7 }
 0x18d   : > { %v624_v43 = vmul.f32 %v608_v35, %v2619_v34  ;;  %v610_v44 = vperm.slane %v602_v36, 0  ;;  %v609_v45 = vperm.slane %v601_v37, 0  ;;  %v611_v46 = vperm.slane %v603_v38, 0 }
 0x18e   : > { %v612_v48 = vperm.slane %v604_v41, 0  ;;  %v613_v52 = vperm.slane %v605_v42, 0  ;;  %v614_v63 = vperm.slane %v606_v58, 0  ;;  %v615_v3 = vperm.slane %v607_v61, 0 }
 0x18f   : > { %v632_v49 = vsel %vm437_vm0, %v624_v43, 0.0  ;;  %v626_v50 = vmul.f32 %v610_v44, %v2621_v39  ;;  %v625_v51 = vmul.f32 %v609_v45, %v2623_v40  ;;  %v627_v57 = vmul.f32 %v611_v46, %v2626_v47 }
 0x190   : > { %633 = vadd.xlane.f32.xlu2 %v632_v49  ;;  %v628_v59 = vmul.f32 %v612_v48, %v2631_v53  ;;  %v629_v60 = vmul.f32 %v613_v52, %v2633_v54  ;;  %v630_v5 = vmul.f32 %v614_v63, %v2641_v0  ;;  %v631_v6 = vmul.f32 %v615_v3, %v2645_v4 }
 0x191   : > { %v638_v55 = vsel %vm437_vm0, %v626_v50, 0.0  ;;  %v635_v56 = vsel %vm437_vm0, %v625_v51, 0.0  ;;  %v641_v62 = vsel %vm437_vm0, %v627_v57, 0.0  ;;  %v696_v36 = vlaneseq }
 0x192   : > { %639 = vadd.xlane.f32.xlu1 %v638_v55  ;;  %636 = vadd.xlane.f32.xlu0 %v635_v56  ;;  %v644_v1 = vsel %vm437_vm0, %v628_v59, 0.0  ;;  %v647_v2 = vsel %vm437_vm0, %v629_v60, 0.0  ;;  %v650_v7 = vsel %vm437_vm0, %v630_v5, 0.0  ;;  %v653_v8 = vsel %vm437_vm0, %v631_v6, 0.0 }
 0x193   : > { %v2694_v38 = vand.u32 127, %v696_v36 }
 0x198   : > { %642 = vadd.xlane.f32.xlu2 %v641_v62 }
 0x19a   : > { %645 = vadd.xlane.f32.xlu1 %v644_v1  ;;  %648 = vadd.xlane.f32.xlu0 %v647_v2 }
 0x1a0   : > { %651 = vadd.xlane.f32.xlu2 %v650_v7 }
 0x1a2   : > { %654 = vadd.xlane.f32.xlu1 %v653_v8 }
 0x201   : > { %v597_v9 = vpop.f32.mrf.mxu3 }
 0x202   : > { %v656_v10 = vmul.f32 %v597_v9, %v2619_v34  ;;  %v659_v11 = vmul.f32 %v597_v9, %v2626_v47  ;;  %v657_v12 = vmul.f32 %v597_v9, %v2623_v40  ;;  %v658_v17 = vmul.f32 %v597_v9, %v2621_v39 }
 0x203   : > { %v663_v18 = vmul.f32 %v597_v9, %v2645_v4  ;;  %v660_v20 = vmul.f32 %v597_v9, %v2631_v53  ;;  %v661_v27 = vmul.f32 %v597_v9, %v2633_v54  ;;  %v662_v28 = vmul.f32 %v597_v9, %v2641_v0  ;;  %v634_v31 = vpop.xlane.xlu2 %633 }
 0x204   : > { %v664_v13 = vsel %vm437_vm0, %v656_v10, 0.0  ;;  %v673_v14 = vsel %vm437_vm0, %v659_v11, 0.0  ;;  %v667_v15 = vsel %vm437_vm0, %v657_v12, 0.0  ;;  %v670_v22 = vsel %vm437_vm0, %v658_v17, 0.0 }
 0x205   : > { %665 = vadd.xlane.f32.xlu2 %v664_v13  ;;  %674 = vadd.xlane.f32.xlu1 %v673_v14  ;;  %v685_v25 = vsel %vm437_vm0, %v663_v18, 0.0  ;;  %v676_v26 = vsel %vm437_vm0, %v660_v20, 0.0  ;;  %v679_v29 = vsel %vm437_vm0, %v661_v27, 0.0  ;;  %v682_v30 = vsel %vm437_vm0, %v662_v28, 0.0  ;;  %v640_v32 = vpop.xlane.xlu1 %639  ;;  %v637_v35 = vpop.xlane.xlu0 %636  ;;  %v2727_v28 = vld [vmem:[%s369_s18] sm:$0xff]  ;;  %s2351_s18 = smov 24  }
 0x206   : > { %668 = vadd.xlane.f32.xlu0 %v667_v15  ;;  %v698_v43 = vperm.slane %v634_v31, %v2694_v38  ;;  %v699_v44 = vperm.slane %v637_v35, %v2694_v38  ;;  %v700_v45 = vperm.slane %v640_v32, %v2694_v38  ;;  %vm515_vm9 = vcmp.eq.s32.totalorder %v2727_v28, 0 }
 0x208   : > { %v707_v48 = vsel %vm706_vm2, %v699_v44, %v698_v43 }
 0x209   : > { %v709_v52 = vsel %vm708_vm3, %v700_v45, %v707_v48 }
 0x20b   : > { %v643_v33 = vpop.xlane.xlu2 %642 }
 0x20c   : > { %v701_v50 = vperm.slane %v643_v33, %v2694_v38 }
 0x20d   : > { %671 = vadd.xlane.f32.xlu2 %v670_v22  ;;  %686 = vadd.xlane.f32.xlu1 %v685_v25  ;;  %v646_v37 = vpop.xlane.xlu1 %645  ;;  %v649_v42 = vpop.xlane.xlu0 %648 }
 0x20e   : > { %677 = vadd.xlane.f32.xlu0 %v676_v26  ;;  %v702_v55 = vperm.slane %v646_v37, %v2694_v38  ;;  %v711_v56 = vsel %vm710_vm4, %v701_v50, %v709_v52  ;;  %v703_v58 = vperm.slane %v649_v42, %v2694_v38  ;;  %v738_v22 = vpop.f32.mrf.mxu0 }
 0x210   : > { %v713_v61 = vsel %vm712_vm5, %v702_v55, %v711_v56 }
 0x211   : > { %v715_v3 = vsel %vm714_vm6, %v703_v58, %v713_v61 }
 0x213   : > { %v652_v41 = vpop.xlane.xlu2 %651 }
 0x214   : > { %v704_v2 = vperm.slane %v652_v41, %v2694_v38 }
 0x215   : > { %680 = vadd.xlane.f32.xlu2 %v679_v29  ;;  %v655_v46 = vpop.xlane.xlu1 %654 }
 0x216   : > { %683 = vadd.xlane.f32.xlu0 %v682_v30  ;;  %v705_v7 = vperm.slane %v655_v46, %v2694_v38  ;;  %v717_v9 = vsel %vm716_vm7, %v704_v2, %v715_v3 }
 0x218   : > { %v719_v14 = vsel %vm718_vm8, %v705_v7, %v717_v9 }
 0x219   : > { %v739_v29 = vadd.f32 %v738_v22, %v719_v14 }
 0x226   : > { %865 = vrot.lane.b32.xlu1 %v2588_v24, %s2340_s24 }
 0x22a   : > { %823 = vrot.lane.b32.xlu0 %v2580_v19, %s2339_s14 }
 0x22d   : > { %863 = vrot.lane.b32.xlu2 %v2580_v19, %s2340_s24 }
 0x22e   : > { %1117 = vrot.lane.b32.xlu1 %v2586_v23, %s2341_s11 }
 0x232   : > { %821 = vrot.lane.b32.xlu0 %v2583_v21, %s2339_s14 }
 0x235   : > { %819 = vrot.lane.b32.xlu2 %v2574_v16, %s2339_s14  ;;  %s1720_s14 = sshll.u32 %s427_s25, 4  ;;  %s1721_s14 = int_to_ptr.vmem [resolvable:$true] %s1720_s14 }
 0x236   : > { %861 = vrot.lane.b32.xlu1 %v2583_v21, %s2340_s24 }
 0x23a   : > { %1157 = vrot.lane.b32.xlu0 %v2586_v23, %s2342_s16 }
 0x23d   : > { %1155 = vrot.lane.b32.xlu2 %v2588_v24, %s2342_s16 }
 0x23e   : > { %859 = vrot.lane.b32.xlu1 %v2574_v16, %s2340_s24  ;;  %s1722_s24 = sshll.u32 %s1718_s4, 4  ;;  %s1723_s24 = int_to_ptr.hbm [resolvable:$true] %s1722_s24 }
 0x242   : > { %1115 = vrot.lane.b32.xlu0 %v2588_v24, %s2341_s11 }
 0x245   : > { %1153 = vrot.lane.b32.xlu2 %v2580_v19, %s2342_s16 }
 0x246   : > { %1111 = vrot.lane.b32.xlu1 %v2583_v21, %s2341_s11 }
 0x24a   : > { %1113 = vrot.lane.b32.xlu0 %v2580_v19, %s2341_s11 }
 0x24e   : > { %1149 = vrot.lane.b32.xlu1 %v2574_v16, %s2342_s16 }
 0x252   : > { %1151 = vrot.lane.b32.xlu0 %v2583_v21, %s2342_s16 }
 0x278   : > { %v666_v49 = vpop.xlane.xlu2 %665  ;;  %v675_v57 = vpop.xlane.xlu1 %674 }
 0x279   : > { %v669_v51 = vpop.xlane.xlu0 %668  ;;  %v749_v59 = vperm.slane %v666_v49, %v2694_v38  ;;  %v752_v8 = vperm.slane %v675_v57, %v2694_v38 }
 0x27a   : > { %v750_v60 = vperm.slane %v669_v51, %v2694_v38 }
 0x27c   : > { %v757_v5 = vsel %vm706_vm2, %v750_v60, %v749_v59 }
 0x280   : > { %v672_v62 = vpop.xlane.xlu2 %671  ;;  %v687_v11 = vpop.xlane.xlu1 %686 }
 0x281   : > { %v751_v63 = vperm.slane %v672_v62, %v2694_v38  ;;  %v678_v1 = vpop.xlane.xlu0 %677  ;;  %v756_v25 = vperm.slane %v687_v11, %v2694_v38 }
 0x282   : > { %v753_v12 = vperm.slane %v678_v1, %v2694_v38 }
 0x283   : > { %v758_v6 = vsel %vm708_vm3, %v751_v63, %v757_v5 }
 0x284   : > { %v759_v10 = vsel %vm710_vm4, %v752_v8, %v758_v6 }
 0x285   : > { %v760_v18 = vsel %vm712_vm5, %v753_v12, %v759_v10 }
 0x288   : > { %v681_v13 = vpop.xlane.xlu2 %680 }
 0x289   : > { %v754_v15 = vperm.slane %v681_v13, %v2694_v38  ;;  %v684_v17 = vpop.xlane.xlu0 %683 }
 0x28a   : > { %v755_v20 = vperm.slane %v684_v17, %v2694_v38 }
 0x28b   : > { %v761_v26 = vsel %vm714_vm6, %v754_v15, %v760_v18 }
 0x28c   : > { %v762_v27 = vsel %vm716_vm7, %v755_v20, %v761_v26 }
 0x28d   : > { %v763_v30 = vsel %vm718_vm8, %v756_v25, %v762_v27 }
 0x28e   : > { %v765_v31 = vadd.f32 %v763_v30, %v739_v29 }
 0x290   : > { %v766_v32 = vmul.f32 0.20412415, %v765_v31  ;;  %v864_v36 = vpop.permute.xlu2 %863 }
 0x292   : > { %v767_v33 = vsel %vm515_vm9, -3.4028235e+38, %v766_v32 }
 0x293   : > { %v768_v35 = vsel %vm524_vm1, %v767_v33, -inf }
 0x294   : > { %769 = vmax.xlane.f32.xlu2 %v768_v35 }
 0x298   : > { %v866_v37 = vpop.permute.xlu1 %865  ;;  %v2737_v42 = vpop.permute.xlu2 %819 }
 0x299   : > { %1897 = vmatpush.xpose.msk.msrb.mxu3 %vm524_vm1, %v866_v37 }
 0x29c   : > { %v824_v41 = vpop.permute.xlu0 %823 }
 0x29d   : > { %1893 = vmatpush.xpose.msk.msrb.mxu2 %vm524_vm1, %v824_v41  ;;  %1898 = vmatpush.xpose.msk.msrb.mxu3 %vm524_vm1, %v864_v36 }
 0x2a0   : > { %v1118_v43 = vpop.permute.xlu1 %1117  ;;  %v1156_v46 = vpop.permute.xlu2 %1155 }
 0x2a1   : > { %1904 = vmatpush.xpose.msk.msrb.mxu1 %vm524_vm1, %v1118_v43 }
 0x2a4   : > { %v822_v44 = vpop.permute.xlu0 %821 }
 0x2a5   : > { %1894 = vmatpush.xpose.msk.msrb.mxu2 %vm524_vm1, %v822_v44 }
 0x2a8   : > { %1895 = vmatmul.msk.f32.vlgmr.msrb.gmra.mxu2 %vm524_vm1, %v2737_v42  ;;  %v862_v45 = vpop.permute.xlu1 %861  ;;  %v1154_v50 = vpop.permute.xlu2 %1153 }
 0x2a9   : > { %1899 = vmatpush.xpose.msk.msrb.mxu3 %vm524_vm1, %v862_v45 }
 0x2ac   : > { %v1158_v48 = vpop.permute.xlu0 %1157  ;;  %1109 = vrot.lane.b32.xlu2 %v2574_v16, %s2341_s11  ;;  %s2262_s11 = sshra.s32 %s1723_s24, 4  ;;  %s2263_s11 = int_to_ptr.hbm [resolvable:$true] %s2262_s11 }
 0x2ad   : > { %1909 = vmatpush.xpose.msk.msra.mxu2 %vm524_vm1, %v1158_v48  ;;  %s2264_s16 = scalar_lea.hbm %s2263_s11, 8  ;;  %p2269_p7 = scmp.lt.s32.totalorder %s2263_s11, %s3053_s8 }
 0x2ae   : > { %p2265_p1 = scmp.ne.s32.totalorder %s2263_s11, %s2264_s16 }
 0x2b0   : > { %v860_v49 = vpop.permute.xlu1 %859  ;;  %p2266_p3 = pnand %p2265_p1, %p2484_p4 }
 0x2b1   : > { %1910 = vmatpush.xpose.msk.msra.mxu2 %vm524_vm1, %v1156_v46  ;;  %1900 = vmatmul.msk.f32.vlgmr.msrb.gmra.mxu3 %vm524_vm1, %v860_v49 }
 0x2b2   : > { %p2267_p12 = pneg %p2266_p3 }
 0x2b4   : > { %v1116_v51 = vpop.permute.xlu0 %1115  ;;  %793 = vrot.lane.b32.xlu2 %v2574_v16, %s2343_s17 }
 0x2b5   : > { %1905 = vmatpush.xpose.msk.msrb.mxu1 %vm524_vm1, %v1116_v51  ;;  %1911 = vmatpush.xpose.msk.msra.mxu2 %vm524_vm1, %v1154_v50 }
 0x2b8   : > { %v1112_v52 = vpop.permute.xlu1 %1111 }
 0x2bc   : > { %v1114_v55 = vpop.permute.xlu0 %1113 }
 0x2bd   : > { %1906 = vmatpush.xpose.msk.msrb.mxu1 %vm524_vm1, %v1114_v55 }
 0x2c0   : > { %v1150_v56 = vpop.permute.xlu1 %1149 }
 0x2c1   : > { %1907 = vmatpush.xpose.msk.msrb.mxu1 %vm524_vm1, %v1112_v52  ;;  %1914 = vmatpush.xpose.msk.msra.mxu3 %vm524_vm1, %v1150_v56 }
 0x2c4   : > { %v1152_v57 = vpop.permute.xlu0 %1151 }
 0x2c5   : > { %1912 = vmatpush.xpose.msk.msra.mxu2 %vm524_vm1, %v1152_v57 }
 0x2c8   : > { %1913 = vmatmul.msk.f32.vlgmr.msra.gmra.mxu2 %vm524_vm1, %v1150_v56 }
 0x307   : > { %v770_v58 = vpop.xlane.xlu2 %769 }
 0x308   : > { %v771_v59 = vsub.f32 %v767_v33, %v770_v58 }
 0x30a   : > { %v772_v60 = vmul.f32 1.442695, %v771_v59 }
 0x30c   : > { %2044 = vpow2.f32 %v772_v60 }
 0x30f   : > { %v1110_v61 = vpop.permute.xlu2 %1109 }
 0x310   : > { %1908 = vmatmul.msk.f32.vlgmr.msrb.gmra.mxu1 %vm524_vm1, %v1110_v61  ;;  %1915 = vmatmul.msk.f32.vlgmr.msra.gmra.mxu3 %vm524_vm1, %v1110_v61 }
 0x312   : > { %v2759_v62 = vpop.eup %2044 }
 0x313   : > { %v774_v63 = vsel %vm524_vm1, %v2759_v62, 0.0 }
 0x314   : > { %775 = vadd.xlane.f32.xlu0 %v774_v63 }
 0x317   : > { %v794_v1 = vpop.permute.xlu2 %793 }
 0x318   : > { %814 = vmatpush.msra.mxu0 %v794_v1 }
 0x31a   : > { %1901 = vmatpush.xpose.msk.msrb.mxu0 %vm524_vm1, %v860_v49 }
 0x32b   : > { %v856_v2 = vpop.f32.mrf.mxu2 }
 0x32c   : > { %v907_v3 = vperm.slane %v856_v2, 0  ;;  %v901_v5 = vrot.slane %v856_v2, 2  ;;  %v900_v6 = vrot.slane %v856_v2, 1  ;;  %v902_v7 = vrot.slane %v856_v2, 3 }
 0x32d   : > { %v903_v22 = vrot.slane %v856_v2, 4  ;;  %v904_v27 = vrot.slane %v856_v2, 5  ;;  %v905_v41 = vrot.slane %v856_v2, 6  ;;  %v906_v49 = vrot.slane %v856_v2, 7 }
 0x32e   : > { %v923_v8 = vmul.f32 %v907_v3, %v2619_v34  ;;  %v909_v9 = vperm.slane %v901_v5, 0  ;;  %v908_v10 = vperm.slane %v900_v6, 0  ;;  %v910_v14 = vperm.slane %v902_v7, 0 }
 0x32f   : > { %v911_v30 = vperm.slane %v903_v22, 0  ;;  %v912_v33 = vperm.slane %v904_v27, 0  ;;  %v913_v46 = vperm.slane %v905_v41, 0  ;;  %v914_v55 = vperm.slane %v906_v49, 0 }
 0x330   : > { %v931_v11 = vsel %vm437_vm0, %v923_v8, 0.0  ;;  %v925_v12 = vmul.f32 %v909_v9, %v2621_v39  ;;  %v924_v13 = vmul.f32 %v908_v10, %v2623_v40  ;;  %v926_v20 = vmul.f32 %v910_v14, %v2626_v47 }
 0x331   : > { %932 = vadd.xlane.f32.xlu1 %v931_v11  ;;  %v927_v35 = vmul.f32 %v911_v30, %v2631_v53  ;;  %v928_v37 = vmul.f32 %v912_v33, %v2633_v54  ;;  %v929_v50 = vmul.f32 %v913_v46, %v2641_v0  ;;  %v930_v58 = vmul.f32 %v914_v55, %v2645_v4 }
 0x332   : > { %v937_v15 = vsel %vm437_vm0, %v925_v12, 0.0  ;;  %v934_v17 = vsel %vm437_vm0, %v924_v13, 0.0  ;;  %v940_v29 = vsel %vm437_vm0, %v926_v20, 0.0 }
 0x333   : > { %938 = vadd.xlane.f32.xlu0 %v937_v15  ;;  %935 = vadd.xlane.f32.xlu2 %v934_v17  ;;  %v943_v43 = vsel %vm437_vm0, %v927_v35, 0.0  ;;  %v946_v45 = vsel %vm437_vm0, %v928_v37, 0.0  ;;  %v949_v56 = vsel %vm437_vm0, %v929_v50, 0.0  ;;  %v952_v61 = vsel %vm437_vm0, %v930_v58, 0.0 }
 0x334   : > { %v896_v18 = vpop.f32.mrf.mxu3 }
 0x335   : > { %v955_v25 = vmul.f32 %v896_v18, %v2619_v34  ;;  %v956_v26 = vmul.f32 %v896_v18, %v2623_v40  ;;  %v957_v36 = vmul.f32 %v896_v18, %v2621_v39  ;;  %v958_v48 = vmul.f32 %v896_v18, %v2626_v47 }
 0x336   : > { %v959_v51 = vmul.f32 %v896_v18, %v2631_v53  ;;  %v960_v59 = vmul.f32 %v896_v18, %v2633_v54  ;;  %v961_v60 = vmul.f32 %v896_v18, %v2641_v0  ;;  %v962_v2 = vmul.f32 %v896_v18, %v2645_v4 }
 0x337   : > { %v963_v31 = vsel %vm437_vm0, %v955_v25, 0.0  ;;  %v966_v32 = vsel %vm437_vm0, %v956_v26, 0.0  ;;  %v969_v44 = vsel %vm437_vm0, %v957_v36, 0.0  ;;  %v972_v52 = vsel %vm437_vm0, %v958_v48, 0.0 }
 0x338   : > { %v975_v57 = vsel %vm437_vm0, %v959_v51, 0.0  ;;  %v978_v63 = vsel %vm437_vm0, %v960_v59, 0.0  ;;  %v981_v1 = vsel %vm437_vm0, %v961_v60, 0.0  ;;  %v984_v3 = vsel %vm437_vm0, %v962_v2, 0.0 }
 0x339   : > { %941 = vadd.xlane.f32.xlu1 %v940_v29 }
 0x33b   : > { %964 = vadd.xlane.f32.xlu0 %v963_v31  ;;  %967 = vadd.xlane.f32.xlu2 %v966_v32 }
 0x341   : > { %944 = vadd.xlane.f32.xlu1 %v943_v43 }
 0x343   : > { %970 = vadd.xlane.f32.xlu0 %v969_v44  ;;  %947 = vadd.xlane.f32.xlu2 %v946_v45 }
 0x349   : > { %973 = vadd.xlane.f32.xlu1 %v972_v52 }
 0x34b   : > { %950 = vadd.xlane.f32.xlu0 %v949_v56  ;;  %976 = vadd.xlane.f32.xlu2 %v975_v57  ;;  %v1186_v32 = vpop.f32.mrf.mxu2 }
 0x34c   : > { %v1246_v44 = vmul.f32 %v1186_v32, %v2623_v40  ;;  %v1245_v45 = vmul.f32 %v1186_v32, %v2619_v34  ;;  %v1247_v56 = vmul.f32 %v1186_v32, %v2621_v39 }
 0x34e   : > { %v1256_v52 = vsel %vm437_vm0, %v1246_v44, 0.0  ;;  %v1253_v55 = vsel %vm437_vm0, %v1245_v45, 0.0  ;;  %v1259_v60 = vsel %vm437_vm0, %v1247_v56, 0.0 }
 0x351   : > { %953 = vadd.xlane.f32.xlu1 %v952_v61 }
 0x353   : > { %979 = vadd.xlane.f32.xlu0 %v978_v63  ;;  %982 = vadd.xlane.f32.xlu2 %v981_v1  ;;  %v1248_v63 = vmul.f32 %v1186_v32, %v2626_v47 }
 0x359   : > { %985 = vadd.xlane.f32.xlu1 %v984_v3  ;;  %v1262_v3 = vsel %vm437_vm0, %v1248_v63, 0.0 }
 0x387   : > { %v776_v5 = vpop.xlane.xlu0 %775 }
 0x388   : > { %2046 = vrcp.f32 %v776_v5  ;;  %v788_v18 = vand.u32 2147483648, %v776_v5  ;;  %v786_v29 = vand.u32 2147483647, %v776_v5  ;;  %vm782_vm11 = vweird.f32 %v776_v5 }
 0x38a   : > { %v789_v35 = vor.u32 1.1754944e-38, %v788_v18  ;;  %vm787_vm13 = vcmp.eq.f32.partialorder %v786_v29, 8.507059e+37 }
 0x38d   : > { %v2796_v6 = vpop.f32.mrf.mxu1 }
 0x38e   : > { %v2047_v7 = vpop.eup %2046  ;;  %v1197_v8 = vperm.slane %v2796_v6, 0  ;;  %v1191_v9 = vrot.slane %v2796_v6, 2  ;;  %v1190_v10 = vrot.slane %v2796_v6, 1  ;;  %v1192_v11 = vrot.slane %v2796_v6, 3 }
 0x38f   : > { %v778_v12 = vmul.f32 %v2047_v7, %v776_v5  ;;  %vm783_vm10 = vweird.f32 %v2047_v7  ;;  %v1193_v37 = vrot.slane %v2796_v6, 4  ;;  %v1194_v46 = vrot.slane %v2796_v6, 5 }
 0x390   : > { %v1213_v13 = vmul.f32 %v1197_v8, %v2619_v34  ;;  %v1199_v14 = vperm.slane %v1191_v9, 0  ;;  %v1198_v15 = vperm.slane %v1190_v10, 0  ;;  %v1200_v26 = vperm.slane %v1192_v11, 0  ;;  %vm784_vm12 = vmor %vm782_vm11, %vm783_vm10 }
 0x391   : > { %v779_v17 = vsub.f32 1.0, %v778_v12  ;;  %v1201_v50 = vperm.slane %v1193_v37, 0  ;;  %v1195_v57 = vrot.slane %v2796_v6, 6  ;;  %v1196_v1 = vrot.slane %v2796_v6, 7 }
 0x392   : > { %v1221_v20 = vsel %vm437_vm0, %v1213_v13, 0.0  ;;  %v1215_v22 = vmul.f32 %v1199_v14, %v2621_v39  ;;  %v1214_v25 = vmul.f32 %v1198_v15, %v2623_v40  ;;  %v1216_v36 = vmul.f32 %v1200_v26, %v2626_v47 }
 0x393   : > { %v780_v27 = vmul.f32 %v2047_v7, %v779_v17  ;;  %1222 = vadd.xlane.f32.xlu0 %v1221_v20  ;;  %v1202_v40 = vperm.slane %v1194_v46, 0  ;;  %v1217_v34 = vmul.f32 %v1201_v50, %v2631_v53  ;;  %v1203_v61 = vperm.slane %v1195_v57, 0 }
 0x394   : > { %v1227_v30 = vsel %vm437_vm0, %v1215_v22, 0.0  ;;  %v1224_v31 = vsel %vm437_vm0, %v1214_v25, 0.0  ;;  %v1230_v49 = vsel %vm437_vm0, %v1216_v36, 0.0  ;;  %v1249_v39 = vmul.f32 %v1186_v32, %v2631_v53 }
 0x395   : > { %v781_v33 = vadd.f32 %v2047_v7, %v780_v27  ;;  %1228 = vadd.xlane.f32.xlu1 %v1227_v30  ;;  %1225 = vadd.xlane.f32.xlu2 %v1224_v31  ;;  %v1233_v58 = vsel %vm437_vm0, %v1217_v34, 0.0  ;;  %v1219_v2 = vmul.f32 %v1203_v61, %v2641_v0  ;;  %v1204_v5 = vperm.slane %v1196_v1, 0 }
 0x396   : > { %v1251_v47 = vmul.f32 %v1186_v32, %v2641_v0  ;;  %v1250_v6 = vmul.f32 %v1186_v32, %v2633_v54  ;;  %v1252_v11 = vmul.f32 %v1186_v32, %v2645_v4 }
 0x397   : > { %v785_v41 = vsel %vm784_vm12, %v2047_v7, %v781_v33  ;;  %v1239_v7 = vsel %vm437_vm0, %v1219_v2, 0.0  ;;  %v1220_v8 = vmul.f32 %v1204_v5, %v2645_v4 }
 0x398   : > { %v790_v43 = vsel %vm787_vm13, %v789_v35, %v785_v41  ;;  %v1271_v9 = vsel %vm437_vm0, %v1251_v47, 0.0  ;;  %v1268_v10 = vsel %vm437_vm0, %v1250_v6, 0.0  ;;  %v1274_v12 = vsel %vm437_vm0, %v1252_v11, 0.0 }
 0x399   : > { %v791_v48 = vmul.f32 %v2759_v62, %v790_v43  ;;  %v1218_v62 = vmul.f32 %v1202_v40, %v2633_v54  ;;  %v1242_v53 = vsel %vm437_vm0, %v1220_v8, 0.0 }
 0x39b   : > { %1231 = vadd.xlane.f32.xlu0 %v1230_v49  ;;  %v792_v51 = vsel %vm515_vm9, 0.0, %v791_v48  ;;  %v1236_v59 = vsel %vm437_vm0, %v1218_v62, 0.0 }
 0x39c   : > { %1890 = vmatmul.msk.f32.vlgmr.msra.gmra.mxu0 %vm524_vm1, %v792_v51 }
 0x39d   : > { %1257 = vadd.xlane.f32.xlu1 %v1256_v52  ;;  %1254 = vadd.xlane.f32.xlu2 %v1253_v55 }
 0x3a3   : > { %1234 = vadd.xlane.f32.xlu0 %v1233_v58 }
 0x3a4   : > { %1902 = vmatmul.msk.f32.vlgmr.msrb.gmra.mxu0 %vm524_vm1, %v2737_v42  ;;  %v1265_v42 = vsel %vm437_vm0, %v1249_v39, 0.0  ;;  %v933_v0 = vpop.xlane.xlu1 %932 }
 0x3a5   : > { %1237 = vadd.xlane.f32.xlu1 %v1236_v59  ;;  %1260 = vadd.xlane.f32.xlu2 %v1259_v60  ;;  %v995_v41 = vperm.slane %v933_v0, %v2694_v38 }
 0x3a6   : > { %v939_v54 = vpop.xlane.xlu0 %938  ;;  %v936_v4 = vpop.xlane.xlu2 %935 }
 0x3a7   : > { %v996_v37 = vperm.slane %v936_v4, %v2694_v38  ;;  %v997_v45 = vperm.slane %v939_v54, %v2694_v38 }
 0x3a9   : > { %v1003_v49 = vsel %vm706_vm2, %v996_v37, %v995_v41 }
 0x3aa   : > { %v1004_v56 = vsel %vm708_vm3, %v997_v45, %v1003_v49 }
 0x3ab   : > { %1263 = vadd.xlane.f32.xlu0 %v1262_v3 }
 0x3ac   : > { %v942_v13 = vpop.xlane.xlu1 %941 }
 0x3ad   : > { %1266 = vadd.xlane.f32.xlu1 %v1265_v42  ;;  %1240 = vadd.xlane.f32.xlu2 %v1239_v7  ;;  %v998_v50 = vperm.slane %v942_v13, %v2694_v38 }
 0x3ae   : > { %v965_v14 = vpop.xlane.xlu0 %964  ;;  %v968_v15 = vpop.xlane.xlu2 %967 }
 0x3af   : > { %v1040_v43 = vperm.slane %v968_v15, %v2694_v38  ;;  %v1039_v44 = vperm.slane %v965_v14, %v2694_v38  ;;  %v1005_v59 = vsel %vm710_vm4, %v998_v50, %v1004_v56 }
 0x3b1   : > { %v1047_v34 = vsel %vm706_vm2, %v1040_v43, %v1039_v44 }
 0x3b3   : > { %1243 = vadd.xlane.f32.xlu0 %v1242_v53 }
 0x3b4   : > { %v945_v17 = vpop.xlane.xlu1 %944 }
 0x3b5   : > { %1272 = vadd.xlane.f32.xlu1 %v1271_v9  ;;  %1269 = vadd.xlane.f32.xlu2 %v1268_v10  ;;  %v999_v52 = vperm.slane %v945_v17, %v2694_v38 }
 0x3b6   : > { %v971_v18 = vpop.xlane.xlu0 %970 }
 0x3b7   : > { %v1041_v46 = vperm.slane %v971_v18, %v2694_v38  ;;  %v1006_v1 = vsel %vm712_vm5, %v999_v52, %v1005_v59 }
 0x3b9   : > { %v1048_v57 = vsel %vm708_vm3, %v1041_v46, %v1047_v34 }
 0x3bb   : > { %1275 = vadd.xlane.f32.xlu0 %v1274_v12 }
 0x3bc   : > { %v974_v20 = vpop.xlane.xlu1 %973 }
 0x3bd   : > { %v1042_v51 = vperm.slane %v974_v20, %v2694_v38 }
 0x3be   : > { %v951_v22 = vpop.xlane.xlu0 %950 }
 0x3bf   : > { %v1049_v61 = vsel %vm710_vm4, %v1042_v51, %v1048_v57  ;;  %v1001_v39 = vperm.slane %v951_v22, %v2694_v38  ;;  %v1318_v57 = vpop.f32.mrf.mxu3 }
 0x3c4   : > { %v954_v26 = vpop.xlane.xlu1 %953 }
 0x3c5   : > { %v1002_v2 = vperm.slane %v954_v26, %v2694_v38 }
 0x3c6   : > { %v980_v27 = vpop.xlane.xlu0 %979 }
 0x3c7   : > { %v1044_v63 = vperm.slane %v980_v27, %v2694_v38 }
 0x3cc   : > { %v986_v30 = vpop.xlane.xlu1 %985 }
 0x3cd   : > { %1447 = vrot.lane.b32.xlu2 %v2586_v23, %s2344_s15  ;;  %v1046_v6 = vperm.slane %v986_v30, %v2694_v38 }
 0x3cf   : > { %1407 = vrot.lane.b32.xlu0 %v2586_v23, %s2345_s2  ;;  %v948_v23 = vpop.xlane.xlu2 %947 }
 0x3d0   : > { %v1000_v60 = vperm.slane %v948_v23, %v2694_v38 }
 0x3d2   : > { %v1007_v8 = vsel %vm714_vm6, %v1000_v60, %v1006_v1 }
 0x3d3   : > { %v1008_v11 = vsel %vm716_vm7, %v1001_v39, %v1007_v8 }
 0x3d4   : > { %v1009_v0 = vsel %vm718_vm8, %v1002_v2, %v1008_v11 }
 0x3d5   : > { %1403 = vrot.lane.b32.xlu2 %v2580_v19, %s2345_s2 }
 0x3d7   : > { %1445 = vrot.lane.b32.xlu0 %v2588_v24, %s2344_s15  ;;  %v977_v25 = vpop.xlane.xlu2 %976 }
 0x3d8   : > { %v1043_v58 = vperm.slane %v977_v25, %v2694_v38 }
 0x3da   : > { %v1050_v3 = vsel %vm712_vm5, %v1043_v58, %v1049_v61 }
 0x3db   : > { %v1051_v47 = vsel %vm714_vm6, %v1044_v63, %v1050_v3 }
 0x3df   : > { %1443 = vrot.lane.b32.xlu0 %v2580_v19, %s2344_s15  ;;  %v983_v29 = vpop.xlane.xlu2 %982 }
 0x3e0   : > { %v1045_v5 = vperm.slane %v983_v29, %v2694_v38 }
 0x3e2   : > { %v1052_v15 = vsel %vm716_vm7, %v1045_v5, %v1051_v47 }
 0x3e3   : > { %v1053_v20 = vsel %vm718_vm8, %v1046_v6, %v1052_v15 }
 0x3e7   : > { %1399 = vrot.lane.b32.xlu0 %v2574_v16, %s2345_s2 }
 0x406   : > { %v1223_v31 = vpop.xlane.xlu0 %1222 }
 0x407   : > { %v1285_v53 = vperm.slane %v1223_v31, %v2694_v38 }
 0x408   : > { %v1229_v32 = vpop.xlane.xlu1 %1228  ;;  %v1226_v33 = vpop.xlane.xlu2 %1225 }
 0x409   : > { %v1286_v42 = vperm.slane %v1226_v33, %v2694_v38  ;;  %v1287_v12 = vperm.slane %v1229_v32, %v2694_v38 }
 0x40b   : > { %v1293_v4 = vsel %vm706_vm2, %v1286_v42, %v1285_v53 }
 0x40c   : > { %v1294_v26 = vsel %vm708_vm3, %v1287_v12, %v1293_v4 }
 0x40e   : > { %v1232_v35 = vpop.xlane.xlu0 %1231 }
 0x40f   : > { %v1288_v13 = vperm.slane %v1232_v35, %v2694_v38 }
 0x410   : > { %v1258_v19 = vpop.xlane.xlu1 %1257  ;;  %v1255_v36 = vpop.xlane.xlu2 %1254 }
 0x411   : > { %v1330_v17 = vperm.slane %v1258_v19, %v2694_v38  ;;  %v1329_v18 = vperm.slane %v1255_v36, %v2694_v38  ;;  %v1295_v29 = vsel %vm710_vm4, %v1288_v13, %v1294_v26 }
 0x413   : > { %v1337_v32 = vsel %vm706_vm2, %v1330_v17, %v1329_v18 }
 0x416   : > { %v1235_v48 = vpop.xlane.xlu0 %1234 }
 0x417   : > { %v1289_v23 = vperm.slane %v1235_v48, %v2694_v38 }
 0x418   : > { %v1238_v55 = vpop.xlane.xlu1 %1237  ;;  %v1261_v40 = vpop.xlane.xlu2 %1260 }
 0x419   : > { %v2867_v62 = vpop.f32.mrf.mxu0  ;;  %v1331_v22 = vperm.slane %v1261_v40, %v2694_v38  ;;  %v1296_v33 = vsel %vm712_vm5, %v1289_v23, %v1295_v29  ;;  %v1290_v35 = vperm.slane %v1238_v55, %v2694_v38 }
 0x41b   : > { %v1338_v19 = vsel %vm708_vm3, %v1331_v22, %v1337_v32  ;;  %v1297_v50 = vsel %vm714_vm6, %v1290_v35, %v1296_v33 }
 0x41e   : > { %v1264_v7 = vpop.xlane.xlu0 %1263 }
 0x41f   : > { %v1332_v27 = vperm.slane %v1264_v7, %v2694_v38 }
 0x420   : > { %v1267_v9 = vpop.xlane.xlu1 %1266  ;;  %v1241_v10 = vpop.xlane.xlu2 %1240 }
 0x421   : > { %v1028_v54 = vpop.f32.mrf.mxu0  ;;  %v1333_v36 = vperm.slane %v1267_v9, %v2694_v38  ;;  %v1291_v37 = vperm.slane %v1241_v10, %v2694_v38  ;;  %v1339_v44 = vsel %vm710_vm4, %v1332_v27, %v1338_v19 }
 0x422   : > { %v1029_v14 = vadd.f32 %v1028_v54, %v1009_v0 }
 0x423   : > { %v1340_v51 = vsel %vm712_vm5, %v1333_v36, %v1339_v44  ;;  %v1298_v52 = vsel %vm716_vm7, %v1291_v37, %v1297_v50 }
 0x424   : > { %v1055_v25 = vadd.f32 %v1053_v20, %v1029_v14 }
 0x426   : > { %v1056_v30 = vmul.f32 0.20412415, %v1055_v25  ;;  %v1244_v31 = vpop.xlane.xlu0 %1243 }
 0x427   : > { %v1292_v45 = vperm.slane %v1244_v31, %v2694_v38 }
 0x428   : > { %v1270_v41 = vpop.xlane.xlu2 %1269  ;;  %v1057_v43 = vsel %vm515_vm9, -3.4028235e+38, %v1056_v30  ;;  %v1273_v46 = vpop.xlane.xlu1 %1272 }
 0x429   : > { %v1334_v48 = vperm.slane %v1270_v41, %v2694_v38  ;;  %v1058_v49 = vsel %vm524_vm1, %v1057_v43, -inf  ;;  %v1335_v55 = vperm.slane %v1273_v46, %v2694_v38  ;;  %v1299_v40 = vsel %vm718_vm8, %v1292_v45, %v1298_v52 }
 0x42a   : > { %1059 = vmax.xlane.f32.xlu2 %v1058_v49  ;;  %v1319_v60 = vadd.f32 %v1318_v57, %v1299_v40 }
 0x42b   : > { %v1341_v34 = vsel %vm714_vm6, %v1334_v48, %v1340_v51 }
 0x42c   : > { %v1342_v61 = vsel %vm716_vm7, %v1335_v55, %v1341_v34 }
 0x42e   : > { %v1276_v56 = vpop.xlane.xlu0 %1275 }
 0x42f   : > { %v1336_v58 = vperm.slane %v1276_v56, %v2694_v38 }
 0x430   : > { %v1448_v59 = vpop.permute.xlu2 %1447 }
 0x431   : > { %1922 = vmatpush.xpose.msk.msrb.mxu3 %vm524_vm1, %v1448_v59  ;;  %v1343_v63 = vsel %vm718_vm8, %v1336_v58, %v1342_v61  ;;  %v2060_v58 = vld [vmem:[#allocation11] sm:$0xff] }
 0x432   : > { %v1345_v1 = vadd.f32 %v1343_v63, %v1319_v60 }
 0x434   : > { %v1346_v39 = vmul.f32 0.20412415, %v1345_v1 }
 0x436   : > { %v1347_v2 = vsel %vm515_vm9, -3.4028235e+38, %v1346_v39  ;;  %v2061_v39 = vld [vmem:[#allocation11 + $0x10] sm:$0xff] }
 0x437   : > { %v1348_v3 = vsel %vm524_vm1, %v1347_v2, -inf }
 0x438   : > { %1349 = vmax.xlane.f32.xlu1 %v1348_v3  ;;  %v1404_v8 = vpop.permute.xlu2 %1403  ;;  %v2062_v3 = vld [vmem:[#allocation11 + $0x8] sm:$0xff] }
 0x441   : > { %v1408_v5 = vpop.permute.xlu0 %1407 }
 0x442   : > { %1441 = vrot.lane.b32.xlu2 %v2583_v21, %s2344_s15  ;;  %1917 = vmatpush.xpose.msk.msra.mxu1 %vm524_vm1, %v1408_v5 }
 0x449   : > { %v1446_v42 = vpop.permute.xlu0 %1445 }
 0x44a   : > { %1923 = vmatpush.xpose.msk.msrb.mxu3 %vm524_vm1, %v1446_v42 }
 0x451   : > { %1405 = vrot.lane.b32.xlu1 %v2588_v24, %s2345_s2  ;;  %v1444_v7 = vpop.permute.xlu0 %1443 }
 0x452   : > { %1924 = vmatpush.xpose.msk.msrb.mxu3 %vm524_vm1, %v1444_v7 }
 0x459   : > { %1401 = vrot.lane.b32.xlu1 %v2583_v21, %s2345_s2  ;;  %v1400_v14 = vpop.permute.xlu0 %1399 }
 0x461   : > { %1439 = vrot.lane.b32.xlu1 %v2574_v16, %s2344_s15  ;;  %s2268_s15 = scalar_lea.hbm %s3053_s8, 16 }
 0x462   : > { %p2270_p9 = scmp.lt.s32.totalorder %s2268_s15, %s2264_s16 }
 0x464   : > { %p2271_p8 = por %p2270_p9, %p2269_p7 }
 0x466   : > { %p2272_p10 = pnand %p2271_p8, %p2267_p12 }
 0x469   : > { %1083 = vrot.lane.b32.xlu1 %v2574_v16, %s2346_s22 }
 0x471   : > { %1373 = vrot.lane.b32.xlu1 %v2574_v16, %s2347_s10 }
 0x49d   : > { %v1060_v47 = vpop.xlane.xlu2 %1059 }
 0x49e   : > { %v1061_v6 = vsub.f32 %v1057_v43, %v1060_v47 }
 0x4a0   : > { %v1062_v53 = vmul.f32 1.442695, %v1061_v6 }
 0x4a2   : > { %2048 = vpow2.f32 %v1062_v53  ;;  %v2063_v53 = vld [vmem:[#allocation11 + $0x18] sm:$0xff] }
 0x4a5   : > { %v1442_v24 = vpop.permute.xlu2 %1441 }
 0x4a6   : > { %1925 = vmatpush.xpose.msk.msrb.mxu3 %vm524_vm1, %v1442_v24 }
 0x4a8   : > { %v2049_v9 = vpop.eup %2048 }
 0x4a9   : > { %v1064_v21 = vsel %vm524_vm1, %v2049_v9, 0.0 }
 0x4aa   : > { %1065 = vadd.xlane.f32.xlu2 %v1064_v21 }
 0x4ab   : > { %v1350_v10 = vpop.xlane.xlu1 %1349 }
 0x4ac   : > { %v1351_v11 = vsub.f32 %v1347_v2, %v1350_v10 }
 0x4ae   : > { %v1352_v12 = vmul.f32 1.442695, %v1351_v11 }
 0x4b0   : > { %2050 = vpow2.f32 %v1352_v12 }
 0x4b6   : > { %v2051_v0 = vpop.eup %2050 }
 0x4b7   : > { %v1354_v54 = vsel %vm524_vm1, %v2051_v0, 0.0 }
 0x4b8   : > { %1355 = vadd.xlane.f32.xlu0 %v1354_v54 }
 0x4c3   : > { %v1406_v4 = vpop.permute.xlu1 %1405 }
 0x4c4   : > { %1918 = vmatpush.xpose.msk.msra.mxu1 %vm524_vm1, %v1406_v4 }
 0x4c8   : > { %1919 = vmatpush.xpose.msk.msra.mxu1 %vm524_vm1, %v1404_v8 }
 0x4cb   : > { %v1402_v13 = vpop.permute.xlu1 %1401 }
 0x4cc   : > { %1920 = vmatpush.xpose.msk.msra.mxu1 %vm524_vm1, %v1402_v13  ;;  %v2064_v13 = vld [vmem:[#allocation11 + $0x30] sm:$0xff] }
 0x4cf   : > { %1921 = vmatmul.msk.f32.vlgmr.msra.gmra.mxu1 %vm524_vm1, %v1400_v14 }
 0x4d3   : > { %v1440_v15 = vpop.permute.xlu1 %1439 }
 0x4d4   : > { %1926 = vmatmul.msk.f32.vlgmr.msrb.gmra.mxu3 %vm524_vm1, %v1440_v15 }
 0x4db   : > { %v1084_v17 = vpop.permute.xlu1 %1083 }
 0x4dc   : > { %1104 = vmatpush.msra.mxu0 %v1084_v17 }
 0x4e3   : > { %v1374_v18 = vpop.permute.xlu1 %1373 }
 0x4e4   : > { %1394 = vmatpush.msrb.mxu0 %v1374_v18 }
 0x51d   : > { %v1066_v23 = vpop.xlane.xlu2 %1065 }
 0x51e   : > { %2052 = vrcp.f32 %v1066_v23  ;;  %v1078_v26 = vand.u32 2147483648, %v1066_v23  ;;  %v1076_v29 = vand.u32 2147483647, %v1066_v23  ;;  %vm1072_vm15 = vweird.f32 %v1066_v23 }
 0x520   : > { %v1079_v32 = vor.u32 1.1754944e-38, %v1078_v26  ;;  %vm1077_vm11 = vcmp.eq.f32.partialorder %v1076_v29, 8.507059e+37 }
 0x524   : > { %v2053_v20 = vpop.eup %2052 }
 0x525   : > { %v1068_v22 = vmul.f32 %v2053_v20, %v1066_v23  ;;  %vm1073_vm14 = vweird.f32 %v2053_v20 }
 0x526   : > { %vm1074_vm10 = vmor %vm1072_vm15, %vm1073_vm14 }
 0x527   : > { %v1069_v25 = vsub.f32 1.0, %v1068_v22 }
 0x529   : > { %v1070_v27 = vmul.f32 %v2053_v20, %v1069_v25 }
 0x52b   : > { %v1071_v30 = vadd.f32 %v2053_v20, %v1070_v27  ;;  %v1356_v31 = vpop.xlane.xlu0 %1355  ;;  %v2066_v27 = vld [vmem:[#allocation11 + $0x28] sm:$0xff] }
 0x52c   : > { %2054 = vrcp.f32 %v1356_v31  ;;  %v1368_v44 = vand.u32 2147483648, %v1356_v31  ;;  %v1366_v46 = vand.u32 2147483647, %v1356_v31  ;;  %vm1362_vm13 = vweird.f32 %v1356_v31 }
 0x52d   : > { %v1075_v33 = vsel %vm1074_vm10, %v2053_v20, %v1071_v30 }
 0x52e   : > { %v1080_v35 = vsel %vm1077_vm11, %v1079_v32, %v1075_v33  ;;  %v1369_v49 = vor.u32 1.1754944e-38, %v1368_v44  ;;  %vm1367_vm15 = vcmp.eq.f32.partialorder %v1366_v46, 8.507059e+37 }
 0x52f   : > { %v1081_v19 = vmul.f32 %v2049_v9, %v1080_v35 }
 0x531   : > { %v1082_v36 = vsel %vm515_vm9, 0.0, %v1081_v19 }
 0x532   : > { %v2055_v37 = vpop.eup %2054  ;;  %1903 = vmatmul.msk.f32.vlgmr.msra.gmra.mxu0 %vm524_vm1, %v1082_v36 }
 0x533   : > { %v1358_v41 = vmul.f32 %v2055_v37, %v1356_v31  ;;  %1927 = vmatpush.xpose.msk.msra.mxu0 %vm524_vm1, %v1440_v15  ;;  %vm1363_vm12 = vweird.f32 %v2055_v37  ;;  %v2065_v15 = vld [vmem:[#allocation11 + $0x20] sm:$0xff] }
 0x534   : > { %vm1364_vm14 = vmor %vm1362_vm13, %vm1363_vm12 }
 0x535   : > { %v1359_v43 = vsub.f32 1.0, %v1358_v41 }
 0x537   : > { %v1360_v45 = vmul.f32 %v2055_v37, %v1359_v43 }
 0x539   : > { %v1361_v48 = vadd.f32 %v2055_v37, %v1360_v45 }
 0x53b   : > { %v1365_v50 = vsel %vm1364_vm14, %v2055_v37, %v1361_v48  ;;  %v2067_v37 = vld [vmem:[#allocation11 + $0x38] sm:$0xff] }
 0x53c   : > { %v1370_v51 = vsel %vm1367_vm15, %v1369_v49, %v1365_v50 }
 0x53d   : > { %v1371_v52 = vmul.f32 %v2051_v0, %v1370_v51 }
 0x53f   : > { %v1372_v55 = vsel %vm515_vm9, 0.0, %v1371_v52 }
 0x540   : > { %1916 = vmatmul.msk.f32.vlgmr.msrb.gmra.mxu0 %vm524_vm1, %v1372_v55 }
 0x548   : > { %1928 = vmatmul.msk.f32.vlgmr.msra.gmra.mxu0 %vm524_vm1, %v1400_v14 }
 0x54c   : > { %v1436_v40 = vpop.f32.mrf.mxu1 }
 0x54d   : > { %v1487_v34 = vperm.slane %v1436_v40, 0  ;;  %v1481_v56 = vrot.slane %v1436_v40, 2  ;;  %v1480_v57 = vrot.slane %v1436_v40, 1  ;;  %v1482_v63 = vrot.slane %v1436_v40, 3 }
 0x54e   : > { %v1485_v47 = vrot.slane %v1436_v40, 6  ;;  %v1483_v9 = vrot.slane %v1436_v40, 4  ;;  %v1484_v23 = vrot.slane %v1436_v40, 5  ;;  %v1486_v32 = vrot.slane %v1436_v40, 7 }
 0x54f   : > { %v1503_v59 = vmul.f32 %v2060_v58, %v1487_v34  ;;  %v1489_v60 = vperm.slane %v1481_v56, 0  ;;  %v1488_v61 = vperm.slane %v1480_v57, 0  ;;  %v1490_v8 = vperm.slane %v1482_v63, 0 }
 0x550   : > { %v1493_v0 = vperm.slane %v1485_v47, 0  ;;  %v1491_v4 = vperm.slane %v1483_v9, 0  ;;  %v1492_v26 = vperm.slane %v1484_v23, 0  ;;  %v1494_v36 = vperm.slane %v1486_v32, 0 }
 0x551   : > { %v1511_v1 = vsel %vm437_vm0, %v1503_v59, 0.0  ;;  %v1505_v2 = vmul.f32 %v2061_v39, %v1489_v60  ;;  %v1504_v5 = vmul.f32 %v2062_v3, %v1488_v61  ;;  %v1506_v24 = vmul.f32 %v2063_v53, %v1490_v8 }
 0x552   : > { %1512 = vadd.xlane.f32.xlu1 %v1511_v1  ;;  %v1509_v14 = vmul.f32 %v2064_v13, %v1493_v0  ;;  %v1507_v17 = vmul.f32 %v2065_v15, %v1491_v4  ;;  %v1508_v31 = vmul.f32 %v2066_v27, %v1492_v26  ;;  %v1510_v41 = vmul.f32 %v2067_v37, %v1494_v36 }
 0x553   : > { %v1517_v42 = vsel %vm437_vm0, %v1505_v2, 0.0  ;;  %v1514_v7 = vsel %vm437_vm0, %v1504_v5, 0.0  ;;  %v1520_v54 = vsel %vm437_vm0, %v1506_v24, 0.0 }
 0x554   : > { %1518 = vadd.xlane.f32.xlu0 %v1517_v42  ;;  %1515 = vadd.xlane.f32.xlu2 %v1514_v7  ;;  %v1529_v20 = vsel %vm437_vm0, %v1509_v14, 0.0  ;;  %v1523_v22 = vsel %vm437_vm0, %v1507_v17, 0.0  ;;  %v1526_v19 = vsel %vm437_vm0, %v1508_v31, 0.0  ;;  %v1532_v44 = vsel %vm437_vm0, %v1510_v41, 0.0 }
 0x557   : > { %v1476_v6 = vpop.f32.mrf.mxu3 }
 0x558   : > { %v1537_v21 = vmul.f32 %v2061_v39, %v1476_v6  ;;  %v1535_v10 = vmul.f32 %v2060_v58, %v1476_v6  ;;  %v1536_v18 = vmul.f32 %v2062_v3, %v1476_v6  ;;  %v1540_v29 = vmul.f32 %v2066_v27, %v1476_v6 }
 0x559   : > { %v1538_v30 = vmul.f32 %v2063_v53, %v1476_v6  ;;  %v1539_v43 = vmul.f32 %v2065_v15, %v1476_v6  ;;  %v1542_v46 = vmul.f32 %v2067_v37, %v1476_v6  ;;  %v1541_v48 = vmul.f32 %v2064_v13, %v1476_v6 }
 0x55a   : > { %v1549_v11 = vsel %vm437_vm0, %v1537_v21, 0.0  ;;  %v1543_v12 = vsel %vm437_vm0, %v1535_v10, 0.0  ;;  %v1546_v25 = vsel %vm437_vm0, %v1536_v18, 0.0  ;;  %v1558_v33 = vsel %vm437_vm0, %v1540_v29, 0.0 }
 0x55b   : > { %1550 = vadd.xlane.f32.xlu1 %v1549_v11  ;;  %v1552_v35 = vsel %vm437_vm0, %v1538_v30, 0.0  ;;  %v1555_v45 = vsel %vm437_vm0, %v1539_v43, 0.0  ;;  %v1564_v49 = vsel %vm437_vm0, %v1542_v46, 0.0  ;;  %v1561_v50 = vsel %vm437_vm0, %v1541_v48, 0.0 }
 0x55c   : > { %1544 = vadd.xlane.f32.xlu0 %v1543_v12  ;;  %1521 = vadd.xlane.f32.xlu2 %v1520_v54 }
 0x563   : > { %1530 = vadd.xlane.f32.xlu1 %v1529_v20 }
 0x564   : > { %1524 = vadd.xlane.f32.xlu0 %v1523_v22  ;;  %1547 = vadd.xlane.f32.xlu2 %v1546_v25 }
 0x56b   : > { %1559 = vadd.xlane.f32.xlu1 %v1558_v33 }
 0x56c   : > { %1553 = vadd.xlane.f32.xlu0 %v1552_v35  ;;  %1527 = vadd.xlane.f32.xlu2 %v1526_v19 }
 0x574   : > { %1533 = vadd.xlane.f32.xlu0 %v1532_v44  ;;  %1556 = vadd.xlane.f32.xlu2 %v1555_v45 }
 0x57c   : > { %1565 = vadd.xlane.f32.xlu0 %v1564_v49  ;;  %1562 = vadd.xlane.f32.xlu2 %v1561_v50 }
 0x590   : > { %1663 = vrot.lane.b32.xlu0 %v2574_v16, %s2348_s20 }
 0x5af   : > { %v1106_v59 = vpop.f32.mrf.mxu0 }
 0x5bd   : > { %v1396_v42 = vpop.f32.mrf.mxu0 }
 0x5c5   : > { %v1513_v55 = vpop.xlane.xlu1 %1512  ;;  %v1608_v30 = vpop.f32.mrf.mxu0 }
 0x5c6   : > { %v1575_v39 = vperm.slane %v1513_v55, %v2694_v38 }
 0x5c7   : > { %v1516_v51 = vpop.xlane.xlu2 %1515  ;;  %v1519_v52 = vpop.xlane.xlu0 %1518 }
 0x5c8   : > { %v1576_v63 = vperm.slane %v1516_v51, %v2694_v38  ;;  %v1577_v2 = vperm.slane %v1519_v52, %v2694_v38 }
 0x5ca   : > { %v1583_v16 = vsel %vm706_vm2, %v1576_v63, %v1575_v39 }
 0x5cb   : > { %v1584_v24 = vsel %vm708_vm3, %v1577_v2, %v1583_v16 }
 0x5ce   : > { %v1551_v58 = vpop.xlane.xlu1 %1550 }
 0x5cf   : > { %v1522_v40 = vpop.xlane.xlu2 %1521  ;;  %v1545_v34 = vpop.xlane.xlu0 %1544  ;;  %v1621_v11 = vperm.slane %v1551_v58, %v2694_v38 }
 0x5d0   : > { %v1578_v3 = vperm.slane %v1522_v40, %v2694_v38  ;;  %v1619_v8 = vperm.slane %v1545_v34, %v2694_v38 }
 0x5d2   : > { %v1585_v9 = vsel %vm710_vm4, %v1578_v3, %v1584_v24 }
 0x5d6   : > { %v1531_v1 = vpop.xlane.xlu1 %1530 }
 0x5d7   : > { %v1548_v56 = vpop.xlane.xlu2 %1547  ;;  %v1525_v57 = vpop.xlane.xlu0 %1524  ;;  %v1581_v13 = vperm.slane %v1531_v1, %v2694_v38 }
 0x5d8   : > { %v1620_v5 = vperm.slane %v1548_v56, %v2694_v38  ;;  %v1579_v7 = vperm.slane %v1525_v57, %v2694_v38 }
 0x5da   : > { %v1627_v21 = vsel %vm706_vm2, %v1620_v5, %v1619_v8  ;;  %v1586_v12 = vsel %vm712_vm5, %v1579_v7, %v1585_v9 }
 0x5db   : > { %v1628_v15 = vsel %vm708_vm3, %v1621_v11, %v1627_v21 }
 0x5de   : > { %v1560_v14 = vpop.xlane.xlu1 %1559 }
 0x5df   : > { %v1528_v60 = vpop.xlane.xlu2 %1527  ;;  %v1554_v61 = vpop.xlane.xlu0 %1553  ;;  %v1624_v20 = vperm.slane %v1560_v14, %v2694_v38 }
 0x5e0   : > { %v1580_v47 = vperm.slane %v1528_v60, %v2694_v38  ;;  %v1622_v10 = vperm.slane %v1554_v61, %v2694_v38 }
 0x5e2   : > { %v1587_v54 = vsel %vm714_vm6, %v1580_v47, %v1586_v12  ;;  %v1629_v17 = vsel %vm710_vm4, %v1622_v10, %v1628_v15 }
 0x5e3   : > { %v1588_v23 = vsel %vm716_vm7, %v1581_v13, %v1587_v54 }
 0x5e7   : > { %v1557_v6 = vpop.xlane.xlu2 %1556  ;;  %v1534_v53 = vpop.xlane.xlu0 %1533 }
 0x5e8   : > { %v1623_v0 = vperm.slane %v1557_v6, %v2694_v38  ;;  %v1582_v4 = vperm.slane %v1534_v53, %v2694_v38 }
 0x5ea   : > { %v1630_v18 = vsel %vm712_vm5, %v1623_v0, %v1629_v17  ;;  %v1589_v22 = vsel %vm718_vm8, %v1582_v4, %v1588_v23 }
 0x5eb   : > { %v1631_v31 = vsel %vm714_vm6, %v1624_v20, %v1630_v18  ;;  %v1609_v33 = vadd.f32 %v1608_v30, %v1589_v22  ;;  %vm1702_vm6 = vcmask 130048  }
 0x5ef   : > { %v1563_v25 = vpop.xlane.xlu2 %1562  ;;  %v1566_v26 = vpop.xlane.xlu0 %1565 }
 0x5f0   : > { %v1625_v27 = vperm.slane %v1563_v25, %v2694_v38  ;;  %v1626_v29 = vperm.slane %v1566_v26, %v2694_v38 }
 0x5f2   : > { %v1632_v32 = vsel %vm716_vm7, %v1625_v27, %v1631_v31  ;;  %vm1704_vm7 = vcmask 195584  }
 0x5f3   : > { %v1633_v35 = vsel %vm718_vm8, %v1626_v29, %v1632_v32 }
 0x5f4   : > { %v1635_v19 = vadd.f32 %v1633_v35, %v1609_v33 }
 0x5f6   : > { %v1636_v36 = vmul.f32 0.20412415, %v1635_v19 }
 0x5f8   : > { %v1637_v37 = vsel %vm515_vm9, -3.4028235e+38, %v1636_v36 }
 0x5f9   : > { %v1638_v41 = vsel %vm524_vm1, %v1637_v37, -inf }
 0x5fa   : > { %1639 = vmax.xlane.f32.xlu1 %v1638_v41 }
 0x602   : > { %v1664_v43 = vpop.permute.xlu0 %1663 }
 0x603   : > { %1684 = vmatpush.msrb.mxu2 %v1664_v43 }
 0x613   : > { %1690 = vrot.lane.b32.xlu1 %v1106_v59, %s2349_s29 }
 0x66d   : > { %v1640_v38 = vpop.xlane.xlu1 %1639 }
 0x66e   : > { %v1641_v44 = vsub.f32 %v1637_v37, %v1640_v38 }
 0x670   : > { %v1642_v45 = vmul.f32 1.442695, %v1641_v44 }
 0x672   : > { %2056 = vpow2.f32 %v1642_v45 }
 0x678   : > { %v2057_v46 = vpop.eup %2056 }
 0x679   : > { %v1644_v48 = vsel %vm524_vm1, %v2057_v46, 0.0 }
 0x67a   : > { %1645 = vadd.xlane.f32.xlu2 %v1644_v48 }
 0x685   : > { %v1691_v1 = vpop.permute.xlu1 %1690 }
 0x686   : > { %v1701_v28 = vsel %vm524_vm1, %v2867_v62, %v1691_v1 }
 0x692   : > { %1694 = vrot.lane.b32.xlu2 %v1396_v42, %s2350_s13 }
 0x6ed   : > { %v1646_v49 = vpop.xlane.xlu2 %1645 }
 0x6ee   : > { %2058 = vrcp.f32 %v1646_v49  ;;  %v1658_v55 = vand.u32 2147483648, %v1646_v49  ;;  %v1656_v34 = vand.u32 2147483647, %v1646_v49  ;;  %vm1652_vm3 = vweird.f32 %v1646_v49 }
 0x6f0   : > { %v1659_v57 = vor.u32 1.1754944e-38, %v1658_v55  ;;  %vm1657_vm5 = vcmp.eq.f32.partialorder %v1656_v34, 8.507059e+37 }
 0x6f4   : > { %v2059_v50 = vpop.eup %2058 }
 0x6f5   : > { %v1648_v51 = vmul.f32 %v2059_v50, %v1646_v49  ;;  %vm1653_vm2 = vweird.f32 %v2059_v50  ;;  %v1695_v39 = vpop.permute.xlu2 %1694 }
 0x6f6   : > { %vm1654_vm4 = vmor %vm1652_vm3, %vm1653_vm2  ;;  %v1703_v2 = vsel %vm1702_vm6, %v1701_v28, %v1695_v39 }
 0x6f7   : > { %v1649_v52 = vsub.f32 1.0, %v1648_v51 }
 0x6f9   : > { %v1650_v40 = vmul.f32 %v2059_v50, %v1649_v52 }
 0x6fb   : > { %v1651_v56 = vadd.f32 %v2059_v50, %v1650_v40 }
 0x6fd   : > { %v1655_v58 = vsel %vm1654_vm4, %v2059_v50, %v1651_v56 }
 0x6fe   : > { %v1660_v59 = vsel %vm1657_vm5, %v1659_v57, %v1655_v58 }
 0x6ff   : > { %v1661_v60 = vmul.f32 %v2057_v46, %v1660_v59 }
 0x701   : > { %v1662_v61 = vsel %vm515_vm9, 0.0, %v1661_v60 }
 0x702   : > { %1929 = vmatmul.msk.f32.vlgmr.msrb.gmra.mxu2 %vm524_vm1, %v1662_v61 }
 0x785   : > { %v1686_v63 = vpop.f32.mrf.mxu2 }
 0x786   : > { %1698 = vrot.lane.b32.xlu0 %v1686_v63, %s2351_s18 }
 0x7f8   : > { %v1699_v16 = vpop.permute.xlu0 %1698 }
 0x7f9   : > { %v1705_v3 = vsel %vm1704_vm7, %v1703_v2, %v1699_v16 }
 0x7fa   : > { %1706 = vst.msk [vmem:[%s427_s25] sm:$0xff] %vm437_vm0, %v1705_v3 }
 0x7fb   : > { %2275 = shalt.err (!%p2272_p10)
}
 0x7fc   : > { %1954 = dma.vmem_to_hbm [thread:$0]  (%p2484_p4), %s1721_s14, 128, %s1723_s24, %s1708_s12  }
 0x7fd PF: > { %s1734_s6 = sand.u32 1, %s2318_s27   ;;  %p3075_p11 = scmp.ge.s32.totalorder %s2330_s30, 2 }
 0x7fe   : > { %s1735_s10 = scalar_lea.sflag [#allocation4], %s1734_s6 }
 0x7ff   : > { %p1977_p5 = pnand %p3075_p11, %p2488_p6 }
 0x801   : > { %p1978_p13 = pneg %p1977_p5 }
 0x803   : > { %2313 = dma.done.wait (%p1978_p13), %s1735_s10, 128  }
 0x804   : > { %2315 = vsyncadd (%p1978_p13), %s1735_s10, 4294967168  ;;  %s3076_s30 = sld [smem:[#allocation21_spill]]  ;;  %s3079_s27 = smov %s2322_s28 }
 0x805   : > { %s3077_s20 = sld [smem:[#allocation20_spill]] }
 0x806   : > { %s3078_s29 = sld [smem:[#allocation22_spill]] }
 0x80a   : > { %p26_p0 = scmp.ge.s32.totalorder %s3076_s30, 4  }
 0x80b   : > { %s3080_s28 = smov %s3077_s20 }
 0x80c   :  { %28 = sbr.rel (!%p26_p0) target bundleno = 14 (0xe), region = 126 }
 0x811   :  { %1741 = vsyncpa [#allocation3], 1 }
 0x812   :  { %1743 = vsyncpa [#allocation3 + $0x1], 1 }
 0x813   :  { %1744 = vsyncpa [#allocation6], 1 }
 0x814   :  { %1746 = vsyncpa [#allocation6 + $0x1], 1 }
 0x815   :  { %1747 = vsyncpa [#allocation9], 1 }
 0x816   :  { %1748 = vsyncpa [#allocation12], 1 }
 0x817   :  { %1749 = vsyncpa [#allocation4], 1 }
 0x818   :  { %1751 = vsyncpa [#allocation4 + $0x1], 1 }

</bundles_post_ra>
